<compile_context>
chip_gen: v7x
topology: tpu7x:2x2x1
jax: 0.10.0
libtpu: 0.0.40
codegen_flags: <defaults>
</compile_context>

<pallas_src>
import functools
from math import sqrt

import jax
import jax.numpy as jnp
from jax.experimental import pallas as pl
from jax.experimental.pallas import tpu as pltpu


def _round_up(x, n):
    return ((x + n - 1) // n) * n


def _vmem_capacity_bytes():
    """Per-TensorCore VMEM capacity; conservative 64 MiB (v7x) fallback."""
    try:
        cap = int(getattr(pltpu.get_tpu_info(), "vmem_capacity_bytes", 0))
        if cap > 0:
            return cap
    except Exception:
        pass
    return 64 << 20


def _tensorcores_per_chip():
    """2 TensorCores on v7x (megacore row sharding), else 1."""
    try:
        kind = jax.devices()[0].device_kind.lower()
    except Exception:
        return 1
    return 2 if ("v7" in kind or "7x" in kind) else 1


@functools.lru_cache(maxsize=None)
def _single_buffer_supported():
    """Whether BlockSpec(pipeline_mode=pl.Buffered(1)) is accepted (single-buffer residents)."""
    try:
        pl.BlockSpec((8, 128), lambda i: (0, 0), pipeline_mode=pl.Buffered(1))
        return True
    except Exception:
        return False


def _resident_spec(block_shape, index_map):
    """Constant-index operand: single-buffer it when the API allows."""
    if _single_buffer_supported():
        return pl.BlockSpec(block_shape, index_map, pipeline_mode=pl.Buffered(1))
    return pl.BlockSpec(block_shape, index_map)


# --------------------------------------------------------------------------- kernels
def _sine_kernel_resident(x_ref, w_ref, b_ref, o_ref, *,
                          omega_0, has_skip, inv_skip, compute_dtype):
    # x_ref: (tm, in_f)   w_ref: (in_f, out_fp)   b_ref: (1, out_fp)   o_ref: (tm, out_fp)
    x = x_ref[...]
    a = x if compute_dtype is None else x.astype(compute_dtype)
    w = w_ref[...] if compute_dtype is None else w_ref[...].astype(compute_dtype)
    y = jnp.dot(a, w, preferred_element_type=jnp.float32)
    y = y + b_ref[...].astype(jnp.float32)
    out = jnp.sin(omega_0 * y)
    if has_skip:
        # in_f == out_fp here (out_f is never padded on the skip path), shapes align.
        out = out * inv_skip + x.astype(jnp.float32)
    o_ref[...] = out.astype(o_ref.dtype)


def _sine_kernel_nblocked(x_ref, w_ref, b_ref, o_ref, *,
                          omega_0, has_skip, inv_skip, tn, compute_dtype):
    # x_ref: (tm, K)   w_ref: (K, tn)   b_ref: (1, tn)   o_ref: (tm, tn)
    x = x_ref[...]
    a = x if compute_dtype is None else x.astype(compute_dtype)
    w = w_ref[...] if compute_dtype is None else w_ref[...].astype(compute_dtype)
    y = jnp.dot(a, w, preferred_element_type=jnp.float32)
    y = y + b_ref[...].astype(jnp.float32)
    out = jnp.sin(omega_0 * y)
    if has_skip:
        col0 = pl.multiple_of(pl.program_id(1) * tn, 128)
        out = out * inv_skip + x_ref[:, pl.ds(col0, tn)].astype(jnp.float32)
    o_ref[...] = out.astype(o_ref.dtype)


# --------------------------------------------------------------------------- wrapper
def sine_layer_forward(x, weight_t, bias, *, omega_0=30.0, has_skip=False,
                       skip_idx=1, tm=None, matmul_dtype=None):
    """x: (..., in_f); weight_t: (in_f, out_f) == W.T; bias: (out_f,) or None."""
    in_f, out_f = weight_t.shape
    if has_skip:
        assert in_f == out_f, "skip connection requires in_features == out_features"
    if bias is None:
        bias = jnp.zeros((out_f,), dtype=weight_t.dtype)

    orig_shape = x.shape
    x2d = x.reshape(-1, in_f)
    m = x2d.shape[0]
    user_tm = tm is not None

    x_item = x.dtype.itemsize
    w_item = weight_t.dtype.itemsize
    out_item = x_item

    cap = _vmem_capacity_bytes()
    budget = int(cap * 0.70)     # planning target
    ceiling = int(cap * 0.80)    # hard scoped-VMEM ceiling (~51 MiB v7x, ~102 MiB v5e/v6e)
    headroom = 6 << 20           # pipeline metadata + Mosaic internal scratch
    cores = _tensorcores_per_chip()
    inv_skip = 1.0 / float(skip_idx)

    # Lane-dense output padding only when it costs nothing semantically: with a skip
    # connection the natural width is kept so the x-add stays column-aligned.
    if out_f % 128 != 0 and not has_skip:
        out_f_pad = _round_up(out_f, 128)
    else:
        out_f_pad = out_f

    in_f_sub = _round_up(in_f, 8)            # sublane padding of resident weight
    in_f_lane = _round_up(in_f, 128)         # lane padding of the x tile in VMEM
    out_f_lane = _round_up(out_f_pad, 128)   # physical lane width of out / W tiles

    n_w_buf = 1 if _single_buffer_supported() else 2
    resident_bytes = n_w_buf * (in_f_sub * out_f_lane + 8 * out_f_lane) * w_item
    # per-row bytes: double-buffered x and out tiles + ~2 f32 intermediates (y, out)
    per_row = 2 * in_f_lane * x_item + 2 * out_f_lane * out_item + 2 * out_f_lane * 4

    use_resident = resident_bytes + 128 * per_row + headroom <= ceiling

    if use_resident:
        # ---------------- resident-weight path: 1-D row grid, ragged last tile masked
        if tm is None:
            avail = min(budget, ceiling) - headroom - resident_bytes
            tm = max(128, min(2048, (avail // per_row // 128) * 128))
        tm = max(8, (tm // 8) * 8)
        if m <= tm:
            tm = max(8, _round_up(m, 8))
        grid_m = pl.cdiv(m, tm)

        if cores >= 2 and m > 128 and not user_tm:
            if grid_m < cores:                       # give every core work
                tm = max(128, _round_up(pl.cdiv(m, cores), 128))
                grid_m = pl.cdiv(m, tm)
            if grid_m > 1 and grid_m % cores != 0:   # balanced megacore split
                tm_try = max(128, _round_up(pl.cdiv(m, _round_up(grid_m, cores)), 128))
                if pl.cdiv(m, tm_try) % cores == 0:
                    tm = tm_try
                    grid_m = pl.cdiv(m, tm)

        plan = resident_bytes + tm * per_row + headroom
        vmem_limit = int(min(ceiling, max(plan, 32 << 20)))

        w_in = weight_t
        b_in = bias.reshape(1, out_f)
        if out_f_pad != out_f:                       # tiny weight/bias pad only
            w_in = jnp.pad(weight_t, ((0, 0), (0, out_f_pad - out_f)))
            b_in = jnp.pad(b_in, ((0, 0), (0, out_f_pad - out_f)))

        kernel = functools.partial(
            _sine_kernel_resident, omega_0=float(omega_0), has_skip=bool(has_skip),
            inv_skip=inv_skip, compute_dtype=matmul_dtype)

        out_p = pl.pallas_call(
            kernel,
            out_shape=jax.ShapeDtypeStruct((m, out_f_pad), x.dtype),
            grid_spec=pltpu.PrefetchScalarGridSpec(
                num_scalar_prefetch=0,
                grid=(grid_m,),
                in_specs=[
                    pl.BlockSpec((tm, in_f), lambda i: (i, 0)),        # row tile of x
                    _resident_spec((in_f, out_f_pad), lambda i: (0, 0)),  # full weight
                    _resident_spec((1, out_f_pad), lambda i: (0, 0)),     # bias
                ],
                out_specs=pl.BlockSpec((tm, out_f_pad), lambda i: (i, 0)),
            ),
            compiler_params=pltpu.CompilerParams(
                dimension_semantics=("parallel",),
                vmem_limit_bytes=vmem_limit,
            ),
        )(x2d, w_in, b_in)

    else:
        # ---------------- N-blocked fallback: weight too large to stay resident ------
        out_f_pad = _round_up(out_f, 128)
        # With a skip add we need x columns aligned with every output tile, so pad the
        # K dim of x and W to out_f_pad (zeros -> matmul unchanged) in this rare path.
        k_dim = out_f_pad if has_skip else in_f
        k_sub = _round_up(k_dim, 8)
        k_lane = _round_up(k_dim, 128)

        def nb_bytes(tm_, tn_):
            w_tile = 2 * (k_sub * tn_ + 8 * tn_) * w_item              # dbl-buffered W + bias tiles
            rows = 2 * k_lane * x_item + 2 * tn_ * out_item + 2 * tn_ * 4
            return w_tile + tm_ * rows + headroom

        tn = min(out_f_pad, 512)
        while tn > 128 and (out_f_pad % tn != 0 or nb_bytes(128, tn) > ceiling):
            tn -= 128
        if out_f_pad % tn != 0 or nb_bytes(128, tn) > ceiling:
            # TODO(synk): K-split accumulator path for in_f too large for one weight tile.
            raise ValueError("SineLayer weight too large for VMEM even with N-blocking.")

        if tm is None:
            tm = 128
            while tm < 1024 and nb_bytes(tm * 2, tn) <= min(budget, ceiling):
                tm *= 2
        tm = max(8, (tm // 8) * 8)
        if m <= tm:
            tm = max(8, _round_up(m, 8))
        grid_m = pl.cdiv(m, tm)
        grid_n = out_f_pad // tn

        x_in, w_in, b_in = x2d, weight_t, bias.reshape(1, out_f)
        if out_f_pad != out_f:
            w_in = jnp.pad(w_in, ((0, 0), (0, out_f_pad - out_f)))
            b_in = jnp.pad(b_in, ((0, 0), (0, out_f_pad - out_f)))
        if k_dim != in_f:
            x_in = jnp.pad(x_in, ((0, 0), (0, k_dim - in_f)))
            w_in = jnp.pad(w_in, ((0, k_dim - in_f), (0, 0)))

        kernel = functools.partial(
            _sine_kernel_nblocked, omega_0=float(omega_0), has_skip=bool(has_skip),
            inv_skip=inv_skip, tn=tn, compute_dtype=matmul_dtype)

        vmem_limit = int(min(ceiling, max(nb_bytes(tm, tn), 32 << 20)))

        out_p = pl.pallas_call(
            kernel,
            out_shape=jax.ShapeDtypeStruct((m, out_f_pad), x.dtype),
            grid_spec=pltpu.PrefetchScalarGridSpec(
                num_scalar_prefetch=0,
                grid=(grid_m, grid_n),
                in_specs=[
                    pl.BlockSpec((tm, k_dim), lambda i, j: (i, 0)),   # x row tile, N-resident
                    pl.BlockSpec((k_dim, tn), lambda i, j: (0, j)),   # weight column tile
                    pl.BlockSpec((1, tn), lambda i, j: (0, j)),       # bias tile
                ],
                out_specs=pl.BlockSpec((tm, tn), lambda i, j: (i, j)),
            ),
            compiler_params=pltpu.CompilerParams(
                dimension_semantics=("parallel", "parallel"),
                vmem_limit_bytes=vmem_limit,
            ),
        )(x_in, w_in, b_in)

    out2d = out_p if out_p.shape[1] == out_f else out_p[:, :out_f]
    return out2d.reshape(orig_shape[:-1] + (out_f,))


def init_sine_layer_params(key, in_features, out_features, *, is_first=False,
                           omega_0=30.0, dtype=jnp.float32):
    """Deterministic init matching the PyTorch module's init_weights()."""
    kw, kb = jax.random.split(key)
    bound_w = (1.0 / in_features) if is_first else sqrt(6.0 / in_features) / omega_0
    # Stored transposed: (in_features, out_features) == W.T
    weight_t = jax.random.uniform(kw, (in_features, out_features), dtype,
                                  minval=-bound_w, maxval=bound_w)
    bound_b = 1.0 / sqrt(in_features)   # nn.Linear default bias init
    bias = jax.random.uniform(kb, (out_features,), dtype,
                              minval=-bound_b, maxval=bound_b)
    return weight_t, bias


if __name__ == "__main__":
    key = jax.random.PRNGKey(0)
    k_x, k_p1, k_p2 = jax.random.split(key, 3)

    # Case 1: square layer with skip connection, deliberately non-aligned shapes
    # (ragged M = 100 rows, ragged features = 48) -> exercises the masked edge tile
    # and the unpadded skip path.
    batch, seq, feat = 2, 50, 48
    omega_0, skip_idx = 30.0, 2
    x = jax.random.normal(k_x, (batch, seq, feat), jnp.float32)
    w1_t, b1 = init_sine_layer_params(k_p1, feat, feat, is_first=False, omega_0=omega_0)

    out1 = sine_layer_forward(x, w1_t, b1, omega_0=omega_0, has_skip=True,
                              skip_idx=skip_idx)
    out1 = jax.block_until_ready(out1)
    ref1 = jnp.sin(omega_0 * (x @ w1_t + b1)) / skip_idx + x
    assert out1.shape == ref1.shape, (out1.shape, ref1.shape)
    assert jnp.allclose(out1, ref1, atol=1e-5, rtol=1e-5)

    # Case 2: first layer, no skip, ragged out_f (80 -> padded to 128 lane-dense).
    out_feat = 80
    w2_t, b2 = init_sine_layer_params(k_p2, feat, out_feat, is_first=True, omega_0=omega_0)
    out2 = sine_layer_forward(x, w2_t, b2, omega_0=omega_0, has_skip=False)
    out2 = jax.block_until_ready(out2)
    ref2 = jnp.sin(omega_0 * (x @ w2_t + b2))
    assert out2.shape == ref2.shape, (out2.shape, ref2.shape)
    assert jnp.allclose(out2, ref2, atol=1e-5, rtol=1e-5)

    print("KERNEL_OK")
</pallas_src>

<mosaic_0001>
module attributes {stable_mosaic.version = 11 : i64} {
  func.func @_sine_kernel_resident(%arg0: i32, %arg1: memref<104x48xf32, #tpu.memory_space<vmem>>, %arg2: memref<48x48xf32, #tpu.memory_space<vmem>>, %arg3: memref<1x48xf32, #tpu.memory_space<vmem>>, %arg4: memref<104x48xf32, #tpu.memory_space<vmem>>) attributes {dimension_semantics = [#tpu.dimension_semantics<parallel>], iteration_bounds = array<i64: 1>, scalar_prefetch = 0 : i64, scratch_operands = 0 : i64, tpu.core_type = #tpu.core_type<tc>, window_params = [{transform_indices = @transform_0, window_bounds = array<i64: 104, 48>}, {pipeline_mode = #tpu.pipeline_mode<synchronous>, transform_indices = @transform_1, window_bounds = array<i64: 48, 48>}, {pipeline_mode = #tpu.pipeline_mode<synchronous>, transform_indices = @transform_2, window_bounds = array<i64: 1, 48>}, {transform_indices = @transform_3, window_bounds = array<i64: 104, 48>}]} {
    %c0 = arith.constant 0 : index
    %c0_0 = arith.constant 0 : index
    %0 = vector.load %arg1[%c0, %c0_0] : memref<104x48xf32, #tpu.memory_space<vmem>>, vector<104x48xf32>
    %c0_1 = arith.constant 0 : index
    %c0_2 = arith.constant 0 : index
    %1 = vector.load %arg2[%c0_1, %c0_2] : memref<48x48xf32, #tpu.memory_space<vmem>>, vector<48x48xf32>
    %cst = arith.constant dense<0.000000e+00> : vector<104x48xf32>
    %2 = tpu.matmul %0, %1, %cst {dimension_numbers = #tpu.dot_dimension_numbers<[1], [0], [0], [1], [0, 0, 1, 1], [], []>} : vector<104x48xf32>, vector<48x48xf32>, vector<104x48xf32> -> vector<104x48xf32>
    %c0_3 = arith.constant 0 : index
    %c0_4 = arith.constant 0 : index
    %3 = vector.load %arg3[%c0_3, %c0_4] : memref<1x48xf32, #tpu.memory_space<vmem>>, vector<1x48xf32>
    %4 = vector.broadcast %3 : vector<1x48xf32> to vector<104x48xf32>
    %5 = arith.addf %2, %4 : vector<104x48xf32>
    %cst_5 = arith.constant 3.000000e+01 : f32
    %6 = vector.broadcast %cst_5 : f32 to vector<104x48xf32>
    %7 = arith.mulf %6, %5 : vector<104x48xf32>
    %8 = math.sin %7 : vector<104x48xf32>
    %cst_6 = arith.constant 5.000000e-01 : f32
    %9 = vector.broadcast %cst_6 : f32 to vector<104x48xf32>
    %10 = arith.mulf %8, %9 : vector<104x48xf32>
    %11 = arith.addf %10, %0 : vector<104x48xf32>
    %c0_7 = arith.constant 0 : index
    %c0_8 = arith.constant 0 : index
    %12 = vector.load %arg4[%c0_7, %c0_8] : memref<104x48xf32, #tpu.memory_space<vmem>>, vector<104x48xf32>
    tpu.vector_store %arg4[%c0_7, %c0_8], %11 {strides = array<i32>} : memref<104x48xf32, #tpu.memory_space<vmem>>, vector<104x48xf32>,
    return
  }
  func.func @transform_0(%arg0: i32) -> (i32, i32) {
    %c0_i32 = arith.constant 0 : i32
    %c0_i32_0 = arith.constant 0 : i32
    return %arg0, %c0_i32 : i32, i32
  }
  func.func @transform_1(%arg0: i32) -> (i32, i32) {
    %c0_i32 = arith.constant 0 : i32
    %c0_i32_0 = arith.constant 0 : i32
    %c0_i32_1 = arith.constant 0 : i32
    return %c0_i32, %c0_i32_0 : i32, i32
  }
  func.func @transform_2(%arg0: i32) -> (i32, i32) {
    %c0_i32 = arith.constant 0 : i32
    %c0_i32_0 = arith.constant 0 : i32
    %c0_i32_1 = arith.constant 0 : i32
    return %c0_i32, %c0_i32_0 : i32, i32
  }
  func.func @transform_3(%arg0: i32) -> (i32, i32) {
    %c0_i32 = arith.constant 0 : i32
    %c0_i32_0 = arith.constant 0 : i32
    return %arg0, %c0_i32 : i32, i32
  }
}

</mosaic_0001>

<bundles_post_ra>
// kernel: tpu_custom_call.1
= control target key start
LH: loop header
LB: loop body
LE: loop exit
PB: predicated region body
PF: predicated region fallthrough
CT: control target
= control target key end

     0   :  { %v1895_v0 = vmov 0.0|0.0   ;;  %vm1896_vm0 = vmmov 0   ;;  %v1897_v6 = vmov 0.0   ;;  %vm40_vm1 = vcmask 392192   ;;  %s3145_s1 = inlined_call_operand.vmem [shape: f32[48,48], index: 1, kind: input, shape index: {}]   ;;  %s3146_s0 = inlined_call_operand.vmem [shape: f32[100,48], index: 0, kind: input, shape index: {}]   ;;  %s3147_s2 = inlined_call_operand.vmem [shape: f32[1,48], index: 2, kind: input, shape index: {}]   ;;  %s3148_s3 = inlined_call_operand.vmem [shape: f32[100,48], index: 3, kind: output, shape index: {}]  }
   0x1   :  { %1754 = vmatprep.subr.bf16.mxu0 %v1895_v0  ;;  %1763 = vmatprep.subr.bf16.mxu1 %v1895_v0  ;;  %v27_v1 = vld [vmem:[%s3145_s1] sm:$0xff]  ;;  %v28_v2 = vld [vmem:[%s3145_s1 + $0x8] sm:$0xff]  ;;  %v29_v3 = vld [vmem:[%s3145_s1 + $0x10] sm:$0xff] }
   0x2   :  { %v1755_v4 = vpack.c.bf16 %v28_v2, %v27_v1  ;;  %v30_v5 = vld [vmem:[%s3145_s1 + $0x18] sm:$0xff]  ;;  %1715 = vmatprep.mubr.msk.f32.mxu0 %vm1896_vm0, %v1897_v6  ;;  %1736 = vmatprep.mubr.msk.f32.mxu1 %vm1896_vm0, %v1897_v6  ;;  %v31_v8 = vld [vmem:[%s3145_s1 + $0x20] sm:$0xff]  ;;  %v32_v9 = vld [vmem:[%s3145_s1 + $0x28] sm:$0xff] }
   0x3   :  { %v1758_v7 = vpack.c.bf16 %v30_v5, %v29_v3  ;;  %v1761_v10 = vpack.c.bf16 %v32_v9, %v31_v8  ;;  %v1947_v11 = vld [vmem:[%s3146_s0] sm:$0xff]  ;;  %v1952_v12 = vld [vmem:[%s3146_s0 + $0x38] sm:$0xff]  ;;  %v15_v13 = vld [vmem:[%s3146_s0 + $0x8] sm:$0xff]  ;;  %v1898_v9 = vmov 683565275  }
   0x4   :  { %1756 = vmatpush3.bf16.msra.mxu0 %v1755_v4  ;;  %1766 = vmatpush3.bf16.msra.mxu1 %v1755_v4  ;;  %v22_v14 = vld [vmem:[%s3146_s0 + $0x40] sm:$0xff]  ;;  %v16_v15 = vld [vmem:[%s3146_s0 + $0x10] sm:$0xff]  ;;  %v23_v16 = vld [vmem:[%s3146_s0 + $0x48] sm:$0xff] }
   0x5   :  { %1757 = vmatprep.subr.bf16.mxu0 %v1895_v0  ;;  %1764 = vmatprep.subr.bf16.mxu1 %v1895_v0  ;;  %v17_v17 = vld [vmem:[%s3146_s0 + $0x18] sm:$0xff]  ;;  %v24_v18 = vld [vmem:[%s3146_s0 + $0x50] sm:$0xff]  ;;  %v18_v19 = vld [vmem:[%s3146_s0 + $0x20] sm:$0xff] }
   0x6   :  { %v25_v20 = vld [vmem:[%s3146_s0 + $0x58] sm:$0xff]  ;;  %v19_v21 = vld [vmem:[%s3146_s0 + $0x28] sm:$0xff]  ;;  %v26_v22 = vld [vmem:[%s3146_s0 + $0x60] sm:$0xff] }
   0x7   :  { %v20_v23 = vld [vmem:[%s3146_s0 + $0x30] sm:$0xff]  ;;  %v2016_v24 = vld [vmem:[%s3147_s2] ss:$0 sm:$0xff] }
   0x8   :  { %1759 = vmatpush3.bf16.msra.mxu0 %v1758_v7  ;;  %1767 = vmatpush3.bf16.msra.mxu1 %v1758_v7 }
   0x9   :  { %1760 = vmatprep.subr.bf16.mxu0 %v1895_v0  ;;  %1765 = vmatprep.subr.bf16.mxu1 %v1895_v0 }
   0xc   :  { %1762 = vmatpush3.bf16.msra.mxu0 %v1761_v10  ;;  %1768 = vmatpush3.bf16.msra.mxu1 %v1761_v10 }
   0xf   :  { %1716 = vmatmul.mubr.msk.f32.vlgmr.msra.gmra.mrb[0].mxu0 %vm40_vm1, %v1947_v11  ;;  %1737 = vmatmul.mubr.msk.f32.vlgmr.msra.gmra.mrb[0].mxu1 %vm40_vm1, %v1952_v12 }
  0x10   :  { %1718 = vmatprep.mubr.msk.f32.mxu0 %vm1896_vm0, %v1897_v6  ;;  %1739 = vmatprep.mubr.msk.f32.mxu1 %vm1896_vm0, %v1897_v6 }
  0x13   :  { %1719 = vmatmul.mubr.msk.f32.gmra.mrb[2].mxu0 %vm40_vm1, %v15_v13  ;;  %1740 = vmatmul.mubr.msk.f32.gmra.mrb[2].mxu1 %vm40_vm1, %v22_v14 }
  0x14   :  { %1721 = vmatprep.mubr.msk.f32.mxu0 %vm1896_vm0, %v1897_v6  ;;  %1742 = vmatprep.mubr.msk.f32.mxu1 %vm1896_vm0, %v1897_v6 }
  0x17   :  { %1722 = vmatmul.mubr.msk.f32.gmra.mrb[4].mxu0 %vm40_vm1, %v16_v15  ;;  %1743 = vmatmul.mubr.msk.f32.gmra.mrb[4].mxu1 %vm40_vm1, %v23_v16  ;;  %v1899_v15 = vmov 2475754826  }
  0x18   :  { %1724 = vmatprep.mubr.msk.f32.mxu0 %vm1896_vm0, %v1897_v6  ;;  %1745 = vmatprep.mubr.msk.f32.mxu1 %vm1896_vm0, %v1897_v6 }
  0x1b   :  { %1725 = vmatmul.mubr.msk.f32.gmra.mrb[6].mxu0 %vm40_vm1, %v17_v17  ;;  %1746 = vmatmul.mubr.msk.f32.gmra.mrb[6].mxu1 %vm40_vm1, %v24_v18  ;;  %v1900_v17 = vmov 2131351028  }
  0x1c   :  { %1727 = vmatprep.mubr.msk.f32.mxu0 %vm1896_vm0, %v1897_v6  ;;  %1748 = vmatprep.mubr.msk.f32.mxu1 %vm1896_vm0, %v1897_v6 }
  0x1f   :  { %1728 = vmatmul.mubr.msk.f32.gmra.mrb[8].mxu0 %vm40_vm1, %v18_v19  ;;  %1749 = vmatmul.mubr.msk.f32.gmra.mrb[8].mxu1 %vm40_vm1, %v25_v20  ;;  %v1901_v19 = vmov 2102212464  }
  0x20   :  { %1730 = vmatprep.mubr.msk.f32.mxu0 %vm1896_vm0, %v1897_v6  ;;  %1751 = vmatprep.mubr.msk.f32.mxu1 %vm1896_vm0, %v1897_v6 }
  0x23   :  { %1731 = vmatmul.mubr.msk.f32.gmra.mrb[10].mxu0 %vm40_vm1, %v19_v21  ;;  %1752 = vmatmul.mubr.msk.f32.gmra.mrb[10].mxu1 %vm40_vm1, %v26_v22  ;;  %v1902_v21 = vmov 920167782  }
  0x24   :  { %1733 = vmatprep.mubr.msk.f32.mxu0 %vm1896_vm0, %v1897_v6 }
  0x27   :  { %1734 = vmatmul.mubr.msk.f32.gmra.mrb[12].mxu0 %vm40_vm1, %v20_v23 }
  0xe2   :  { %v146_v25 = vpop.f32.mrb[0].mxu0  ;;  %v181_v26 = vpop.f32.mrb[0].mxu1 }
  0xe3   :  { %v147_v27 = vadd.f32 %v2016_v24, %v146_v25  ;;  %v182_v28 = vadd.f32 %v2016_v24, %v181_v26  ;;  %v1717_v29 = vpop.f32.mrb[1].mxu0  ;;  %v1738_v30 = vpop.f32.mrb[1].mxu1 }
  0xe4   :  { %v1903_v29 = vmov 1326507024  }
  0xe5   :  { %v2020_v31 = vmul.f32 30.0, %v147_v27  ;;  %v2022_v32 = vmul.f32 30.0, %v182_v28 }
  0xe6   :  { %v151_v33 = vpop.f32.mrb[2].mxu0  ;;  %v186_v34 = vpop.f32.mrb[2].mxu1 }
  0xe7   :  { %v223_v35 = vand.u32 2147483647, %v2020_v31  ;;  %v226_v36 = vand.u32 2139095040, %v2020_v31  ;;  %v1720_v37 = vpop.f32.mrb[3].mxu0  ;;  %v1741_v38 = vpop.f32.mrb[3].mxu1  ;;  %v954_v40 = vand.u32 2139095040, %v2022_v32  ;;  %v152_v42 = vadd.f32 %v2016_v24, %v151_v33 }
  0xe8   :  { %v951_v39 = vand.u32 2147483647, %v2022_v32  ;;  %v2045_v1 = vadd.f32 %v2016_v24, %v186_v34  ;;  %vm225_vm15 = vcmp.lt.s32.totalorder %v2020_v31, 0 }
  0xe9   :  { %v227_v41 = vshrl.u32 %v226_v36, 23  ;;  %v230_v43 = vand.u32 8388607, %v223_v35  ;;  %v955_v44 = vshrl.u32 %v954_v40, 23  ;;  %v2035_v48 = vmul.f32 30.0, %v152_v42 }
  0xea   :  { %v958_v45 = vand.u32 8388607, %v951_v39  ;;  %v2033_v46 = vpop.f32.mrb[4].mxu0  ;;  %v2037_v49 = vpop.f32.mrb[4].mxu1 }
  0xeb   :  { %v1632_v47 = vadd.s32 4294967169, %v227_v41  ;;  %v1723_v50 = vpop.f32.mrb[5].mxu0  ;;  %v1660_v51 = vadd.s32 4294967169, %v955_v44  ;;  %v1744_v52 = vpop.f32.mrb[5].mxu1  ;;  %v231_v54 = vor.u32 8388608, %v230_v43  ;;  %v330_v57 = vand.u32 2139095040, %v2035_v48 }
  0xec   :  { %v959_v55 = vor.u32 8388608, %v958_v45  ;;  %v327_v7 = vand.u32 2147483647, %v2035_v48 }
  0xed   :  { %v233_v53 = vadd.s32 1, %v1632_v47  ;;  %v961_v56 = vadd.s32 1, %v1660_v51  ;;  %v331_v60 = vshrl.u32 %v330_v57, 23  ;;  %v2047_v4 = vshll.u32 %v231_v54, 8 }
  0xee   :  { %v2040_v58 = vpop.f32.mrb[6].mxu0  ;;  %v2042_v61 = vpop.f32.mrb[6].mxu1  ;;  %v2051_v6 = vshll.u32 %v959_v55, 8 }
  0xef   :  { %vm234_vm2 = vcmp.gt.s32.totalorder %v233_v53, 0  ;;  %vm962_vm3 = vcmp.gt.s32.totalorder %v961_v56, 0  ;;  %v1726_v2 = vpop.f32.mrb[7].mxu0  ;;  %v1747_v3 = vpop.f32.mrb[7].mxu1  ;;  %v2055_v14 = vadd.s32 4294967169, %v331_v60 }
  0xf0   :  { %v235_v59 = vsel %vm234_vm2, %v233_v53, 0  ;;  %v963_v0 = vsel %vm962_vm3, %v961_v56, 0  ;;  %vm2159_vm3 = vcmp.le.f32.partialorder %v223_v35, 0.7853982 }
  0xf1   :  { %v236_v62 = vshrl.u32 %v235_v59, 5  ;;  %v237_v63 = vand.u32 31, %v235_v59  ;;  %v2049_v5 = vshrl.u32 %v963_v0, 5  ;;  %v965_v13 = vand.u32 31, %v963_v0 }
  0xf3   :  { %v238_v8 = vsub.s32 32, %v237_v63  ;;  %v240_v10 = vshll.u32 %v1898_v9, %v237_v63  ;;  %v243_v16 = vshll.u32 %v1899_v15, %v237_v63  ;;  %v246_v18 = vshll.u32 %v1900_v17, %v237_v63 }
  0xf4   :  { %v249_v20 = vshll.u32 %v1901_v19, %v237_v63  ;;  %v252_v22 = vshll.u32 %v1902_v21, %v237_v63  ;;  %vm255_vm4 = vcmp.lt.s32.totalorder %v236_v62, 1  ;;  %vm257_vm5 = vcmp.lt.s32.totalorder %v236_v62, 3 }
  0xf5   :  { %v241_v23 = vshrl.u32 %v1899_v15, %v238_v8  ;;  %v244_v25 = vshrl.u32 %v1900_v17, %v238_v8  ;;  %v247_v26 = vshrl.u32 %v1901_v19, %v238_v8  ;;  %v239_v27 = vshrl.u32 %v1898_v9, %v238_v8 }
  0xf6   :  { %v250_v28 = vshrl.u32 %v1902_v21, %v238_v8  ;;  %v253_v30 = vshrl.u32 %v1903_v29, %v238_v8  ;;  %v966_v37 = vsub.s32 32, %v965_v13  ;;  %vm258_vm6 = vcmp.lt.s32.totalorder %v236_v62, 4 }
  0xf7   :  { %v242_v33 = vor.u32 %v241_v23, %v240_v10  ;;  %v245_v34 = vor.u32 %v244_v25, %v243_v16  ;;  %v248_v36 = vor.u32 %v247_v26, %v246_v18  ;;  %v968_v41 = vshll.u32 %v1898_v9, %v965_v13 }
  0xf8   :  { %v251_v38 = vor.u32 %v250_v28, %v249_v20  ;;  %v254_v40 = vor.u32 %v253_v30, %v252_v22  ;;  %v971_v52 = vshll.u32 %v1899_v15, %v965_v13  ;;  %vm256_vm7 = vcmp.lt.s32.totalorder %v236_v62, 2 }
  0xf9   :  { %v259_v42 = vsel %vm255_vm4, %v239_v27, %v242_v33  ;;  %v260_v43 = vsel %vm258_vm6, %v248_v36, 2102212464  ;;  %v263_v44 = vsel %vm255_vm4, %v242_v33, %v245_v34  ;;  %v267_v45 = vsel %vm255_vm4, %v245_v34, %v248_v36 }
  0xfa   :  { %v261_v47 = vsel %vm257_vm5, %v245_v34, %v260_v43  ;;  %v264_v50 = vsel %vm258_vm6, %v251_v38, 920167782  ;;  %v268_v51 = vsel %vm258_vm6, %v254_v40, 1326507024  ;;  %v969_v55 = vshrl.u32 %v1899_v15, %v966_v37 }
  0xfb   :  { %v265_v53 = vsel %vm257_vm5, %v248_v36, %v264_v50  ;;  %v269_v54 = vsel %vm257_vm5, %v251_v38, %v268_v51  ;;  %v262_v56 = vsel %vm256_vm7, %v259_v42, %v261_v47  ;;  %v972_v60 = vshrl.u32 %v1900_v17, %v966_v37 }
  0xfc   :  { %v266_v57 = vsel %vm256_vm7, %v263_v44, %v265_v53  ;;  %v270_v59 = vsel %vm256_vm7, %v267_v45, %v269_v54  ;;  %v970_v8 = vor.u32 %v969_v55, %v968_v41  ;;  %v974_v62 = vshll.u32 %v1900_v17, %v965_v13 }
  0xfd   :  { %v2078_v63 = vmul.u32.u64.low %v2047_v4, %v270_v59  ;;  %v2079_v0 = vmul.u32.u64.high %v2047_v4, %v270_v59, %v2078_v63  ;;  %v2082_v2 = vmul.u32.u64.low %v2047_v4, %v266_v57  ;;  %v2083_v3 = vmul.u32.u64.high %v2047_v4, %v266_v57, %v2082_v2 }
  0xfe   :  { %v973_v10 = vor.u32 %v972_v60, %v971_v52  ;;  %v975_v16 = vshrl.u32 %v1901_v19, %v966_v37  ;;  %v977_v18 = vshll.u32 %v1901_v19, %v965_v13  ;;  %v978_v20 = vshrl.u32 %v1902_v21, %v966_v37 }
  0xff   :  { %v980_v22 = vshll.u32 %v1902_v21, %v965_v13  ;;  %v981_v23 = vshrl.u32 %v1903_v29, %v966_v37  ;;  %v278_v25 = vmul.u32 %v2047_v4, %v262_v56  ;;  %v967_v26 = vshrl.u32 %v1898_v9, %v966_v37 }
 0x100   :  { %v976_v27 = vor.u32 %v975_v16, %v974_v62  ;;  %vm983_vm8 = vcmp.lt.s32.totalorder %v2049_v5, 1  ;;  %vm280_vm9 = vc.u32 %v2079_v0, %v2082_v2  ;;  %v281_v28 = vadd.s32 1, %v2083_v3 }
 0x101   :  { %v979_v30 = vor.u32 %v978_v20, %v977_v18  ;;  %vm984_vm10 = vcmp.lt.s32.totalorder %v2049_v5, 2  ;;  %v982_v33 = vor.u32 %v981_v23, %v980_v22  ;;  %vm985_vm11 = vcmp.lt.s32.totalorder %v2049_v5, 3 }
 0x102   :  { %vm986_vm12 = vcmp.lt.s32.totalorder %v2049_v5, 4  ;;  %v991_v13 = vsel %vm983_vm8, %v970_v8, %v973_v10  ;;  %v282_v4 = vsel %vm280_vm9, %v281_v28, %v2083_v3  ;;  %v995_v37 = vsel %vm983_vm8, %v973_v10, %v976_v27 }
 0x103   :  { %v988_v34 = vsel %vm986_vm12, %v976_v27, 2102212464  ;;  %v992_v36 = vsel %vm986_vm12, %v979_v30, 920167782  ;;  %v283_v38 = vadd.s32 %v282_v4, %v278_v25  ;;  %v987_v40 = vsel %vm983_vm8, %v967_v26, %v970_v8 }
 0x104   :  { %v993_v41 = vsel %vm985_vm11, %v976_v27, %v992_v36  ;;  %v996_v42 = vsel %vm986_vm12, %v982_v33, 1326507024  ;;  %v989_v43 = vsel %vm985_vm11, %v973_v10, %v988_v34  ;;  %v337_v47 = vadd.s32 1, %v2055_v14  ;;  %v2122_v10 = vpop.f32.mrb[8].mxu0 }
 0x105   :  { %v994_v44 = vsel %vm984_vm10, %v991_v13, %v993_v41  ;;  %v997_v45 = vsel %vm985_vm11, %v979_v30, %v996_v42  ;;  %v284_v50 = vadd.s32 536870912, %v283_v38  ;;  %v334_v56 = vand.u32 8388607, %v327_v7  ;;  %v1729_v20 = vpop.f32.mrb[9].mxu0 }
 0x106   :  { %v998_v51 = vsel %vm984_vm10, %v995_v37, %v997_v45  ;;  %v2106_v52 = vmul.u32.u64.low %v2051_v6, %v994_v44  ;;  %v2107_v53 = vmul.u32.u64.high %v2051_v6, %v994_v44, %v2106_v52  ;;  %vm338_vm13 = vcmp.gt.s32.totalorder %v337_v47, 0 }
 0x107   :  { %v2111_v54 = vmul.u32.u64.low %v2051_v6, %v998_v51  ;;  %v2112_v55 = vmul.u32.u64.high %v2051_v6, %v998_v51, %v2111_v54  ;;  %v285_v57 = vshrl.u32 %v284_v50, 30  ;;  %v990_v14 = vsel %vm984_vm10, %v987_v40, %v989_v43 }
 0x108   :  { %v339_v59 = vsel %vm338_vm13, %v337_v47, 0  ;;  %v1009_v3 = vadd.s32 1, %v2107_v53  ;;  %v2120_v8 = vmul.f32 30.0, %v2045_v1  ;;  %v1006_v62 = vmul.u32 %v2051_v6, %v990_v14 }
 0x109   :  { %v341_v60 = vand.u32 31, %v339_v59  ;;  %v286_v63 = vshll.u32 %v285_v57, 30  ;;  %vm1008_vm14 = vc.u32 %v2112_v55, %v2106_v52  ;;  %v335_v16 = vor.u32 8388608, %v334_v56 }
 0x10a   :  { %v1010_v22 = vsel %vm1008_vm14, %v1009_v3, %v2107_v53  ;;  %v279_v25 = vadd.s32 %v2082_v2, %v2079_v0  ;;  %v1058_v6 = vand.u32 2139095040, %v2120_v8  ;;  %v2134_v33 = vshrl.u32 %v339_v59, 5 }
 0x10b   :  { %v342_v18 = vsub.s32 32, %v341_v60  ;;  %v287_v5 = vsub.s32 %v283_v38, %v286_v63  ;;  %v1011_v23 = vadd.s32 %v1010_v22, %v1006_v62  ;;  %v2131_v28 = vshll.u32 %v335_v16, 8 }
 0x10c   :  { %v309_v34 = vsub.s32 4, %v285_v57  ;;  %v344_v0 = vshll.u32 %v1898_v9, %v341_v60  ;;  %v347_v38 = vshll.u32 %v1899_v15, %v341_v60  ;;  %v350_v40 = vshll.u32 %v1900_v17, %v341_v60 }
 0x10d   :  { %v289_v1 = vsub.s32 0, %v287_v5  ;;  %v1012_v26 = vadd.s32 536870912, %v1011_v23  ;;  %v345_v27 = vshrl.u32 %v1899_v15, %v342_v18  ;;  %v348_v13 = vshrl.u32 %v1900_v17, %v342_v18 }
 0x10e   :  { %v351_v4 = vshrl.u32 %v1901_v19, %v342_v18  ;;  %v354_v2 = vshrl.u32 %v1902_v21, %v342_v18  ;;  %v357_v41 = vshrl.u32 %v1903_v29, %v342_v18  ;;  %v353_v44 = vshll.u32 %v1901_v19, %v341_v60 }
 0x10f   :  { %v1633_v30 = vmin.u32 %v289_v1, %v287_v5  ;;  %v2138_v36 = vshrl.u32 %v1012_v26, 30  ;;  %v346_v43 = vor.u32 %v345_v27, %v344_v0  ;;  %v1059_v45 = vshrl.u32 %v1058_v6, 23 }
 0x110   :  { %v349_v50 = vor.u32 %v348_v13, %v347_v38  ;;  %v352_v51 = vor.u32 %v351_v4, %v350_v40  ;;  %v356_v53 = vshll.u32 %v1902_v21, %v341_v60  ;;  %v2150_v54 = vsel %vm225_vm15, %v309_v34, %v285_v57 }
 0x111   :  { %v291_v37 = vclz %v1633_v30  ;;  %v1014_v42 = vshll.u32 %v2138_v36, 30  ;;  %v343_v14 = vshrl.u32 %v1898_v9, %v342_v18  ;;  %v355_v59 = vor.u32 %v354_v2, %v353_v44 }
 0x112   :  { %v1037_v63 = vsub.s32 4, %v2138_v36  ;;  %v358_v3 = vor.u32 %v357_v41, %v356_v53  ;;  %vm359_vm2 = vcmp.lt.s32.totalorder %v2134_v33, 1  ;;  %vm361_vm4 = vcmp.lt.s32.totalorder %v2134_v33, 3 }
 0x113   :  { %v1634_v47 = vadd.s32 4294967294, %v291_v37  ;;  %v2152_v56 = vsub.s32 %v1011_v23, %v1014_v42  ;;  %vm362_vm5 = vcmp.lt.s32.totalorder %v2134_v33, 4  ;;  %vm953_vm6 = vcmp.lt.s32.totalorder %v2022_v32, 0 }
 0x114   :  { %v364_v20 = vsel %vm362_vm5, %v352_v51, 2102212464  ;;  %v367_v22 = vsel %vm359_vm2, %v346_v43, %v349_v50  ;;  %v368_v1 = vsel %vm362_vm5, %v355_v59, 920167782  ;;  %v371_v26 = vsel %vm359_vm2, %v349_v50, %v352_v51 }
 0x115   :  { %vm1635_vm0 = vcmp.lt.s32.totalorder %v1634_v47, 0  ;;  %v1017_v57 = vsub.s32 0, %v2152_v56  ;;  %v369_v30 = vsel %vm361_vm4, %v352_v51, %v368_v1  ;;  %v372_v13 = vsel %vm362_vm5, %v358_v3, 1326507024 }
 0x116   :  { %v294_v60 = vsel %vm1635_vm0, 0, %v1634_v47  ;;  %vm360_vm7 = vcmp.lt.s32.totalorder %v2134_v33, 2  ;;  %v363_v34 = vsel %vm359_vm2, %v343_v14, %v346_v43  ;;  %vm2185_vm8 = vcmp.le.f32.partialorder %v951_v39, 0.7853982 }
 0x117   :  { %v295_v16 = vsub.s32 32, %v294_v60  ;;  %v299_v18 = vsub.s32 4294967266, %v294_v60  ;;  %v296_v23 = vshll.u32 %v287_v5, %v294_v60  ;;  %v1661_v35 = vmin.u32 %v1017_v57, %v2152_v56 }
 0x118   :  { %v365_v5 = vsel %vm361_vm4, %v349_v50, %v364_v20  ;;  %v370_v37 = vsel %vm360_vm7, %v367_v22, %v369_v30  ;;  %v1055_v51 = vand.u32 2147483647, %v2120_v8  ;;  %v1007_v39 = vadd.s32 %v2106_v52, %v2112_v55 }
 0x119   :  { %v297_v27 = vshrl.u32 %v279_v25, %v295_v16  ;;  %v300_v6 = vadd.s32 127, %v299_v18  ;;  %v1019_v4 = vclz %v1661_v35  ;;  %v373_v25 = vsel %vm361_vm4, %v355_v59, %v372_v13 }
 0x11a   :  { %v374_v41 = vsel %vm360_vm7, %v371_v26, %v373_v25  ;;  %v2192_v42 = vmul.u32.u64.low %v2131_v28, %v370_v37  ;;  %v2193_v43 = vmul.u32.u64.high %v2131_v28, %v370_v37, %v2192_v42  ;;  %v366_v53 = vsel %vm360_vm7, %v363_v34, %v365_v5 }
 0x11b   :  { %v298_v0 = vor.u32 %v297_v27, %v296_v23  ;;  %v301_v2 = vshll.u32 %v300_v6, 23  ;;  %v1662_v40 = vadd.s32 4294967294, %v1019_v4  ;;  %v1664_v14 = vadd.s32 4294967169, %v1059_v45 }
 0x11c   :  { %v2197_v47 = vmul.u32.u64.low %v2131_v28, %v374_v41  ;;  %v2198_v50 = vmul.u32.u64.high %v2131_v28, %v374_v41, %v2197_v47  ;;  %v312_v60 = vsel %vm2159_vm3, 0, %v2150_v54  ;;  %v1038_v20 = vsel %vm953_vm6, %v1037_v63, %v2138_v36  ;;  %v2217_v36 = vpop.f32.mrb[8].mxu1 }
 0x11d   :  { %v302_v44 = vor.u32 4788187, %v301_v2  ;;  %vm1663_vm9 = vcmp.lt.s32.totalorder %v1662_v40, 0  ;;  %v305_v3 = vcvt.s32.f32 %v298_v0  ;;  %v385_v52 = vadd.s32 1, %v2193_v43  ;;  %v1750_v13 = vpop.f32.mrb[9].mxu1 }
 0x11e   :  { %v1022_v57 = vsel %vm1663_vm9, 0, %v1662_v40  ;;  %v382_v33 = vmul.u32 %v2131_v28, %v366_v53  ;;  %vm384_vm10 = vc.u32 %v2198_v50, %v2192_v42  ;;  %v1065_v45 = vadd.s32 1, %v1664_v14 }
 0x11f   :  { %v303_v59 = vand.u32 2147483647, %v302_v44  ;;  %v1023_v16 = vsub.s32 32, %v1022_v57  ;;  %v1027_v18 = vsub.s32 4294967266, %v1022_v57  ;;  %v1024_v22 = vshll.u32 %v2152_v56, %v1022_v57 }
 0x120   :  { %v386_v35 = vsel %vm384_vm10, %v385_v52, %v2193_v43  ;;  %v316_v26 = vadd.s32 3, %v312_v60  ;;  %vm1066_vm11 = vcmp.gt.s32.totalorder %v1065_v45, 0  ;;  %v1062_v28 = vand.u32 8388607, %v1055_v51 }
 0x121   :  { %v306_v55 = vmul.f32 %v305_v3, %v303_v59  ;;  %v1025_v23 = vshrl.u32 %v1007_v39, %v1023_v16  ;;  %v1028_v54 = vadd.s32 127, %v1027_v18  ;;  %v387_v27 = vadd.s32 %v386_v35, %v382_v33 }
 0x122   :  { %v1067_v30 = vsel %vm1066_vm11, %v1065_v45, 0  ;;  %v1040_v4 = vsel %vm2185_vm8, 0, %v1038_v20  ;;  %v157_v37 = vadd.f32 %v2016_v24, %v2033_v46  ;;  %v2232_v25 = vadd.f32 %v2016_v24, %v2037_v49 }
 0x123   :  { %v307_v1 = vxor.u32 2147483648, %v306_v55  ;;  %v1026_v63 = vor.u32 %v1025_v23, %v1024_v22  ;;  %v1029_v6 = vshll.u32 %v1028_v54, 23  ;;  %v388_v34 = vadd.s32 536870912, %v387_v27 }
 0x124   :  { %v1069_v5 = vand.u32 31, %v1067_v30  ;;  %v2234_v40 = vand.u32 3, %v316_v26  ;;  %v1044_v39 = vadd.s32 3, %v1040_v4  ;;  %v1063_v53 = vor.u32 8388608, %v1062_v28 }
 0x125   :  { %v308_v56 = vsel %vm225_vm15, %v307_v1, %v306_v55  ;;  %v1030_v2 = vor.u32 4788187, %v1029_v6  ;;  %v2236_v41 = vshrl.u32 %v388_v34, 30  ;;  %v1033_v47 = vcvt.s32.f32 %v1026_v63 }
 0x126   :  { %v311_v0 = vsel %vm2159_vm3, %v2020_v31, %v308_v56  ;;  %v1070_v43 = vsub.s32 32, %v1069_v5  ;;  %v1072_v14 = vshll.u32 %v1898_v9, %v1069_v5  ;;  %v1075_v46 = vshll.u32 %v1899_v15, %v1069_v5 }
 0x127   :  { %1830 = vcosq.f32 %v311_v0  ;;  %v1031_v44 = vand.u32 2147483647, %v1030_v2  ;;  %v390_v62 = vshll.u32 %v2236_v41, 30  ;;  %v1078_v60 = vshll.u32 %v1900_v17, %v1069_v5 }
 0x128   :  { %1832 = vsinq.f32 %v311_v0  ;;  %v1073_v49 = vshrl.u32 %v1899_v15, %v1070_v43  ;;  %v1076_v3 = vshrl.u32 %v1900_v17, %v1070_v43  ;;  %vm322_vm12 = vcmp.eq.s32.totalorder %v2234_v40, 2 }
 0x129   :  { %v1034_v59 = vmul.f32 %v1033_v47, %v1031_v44  ;;  %v2245_v57 = vsub.s32 %v387_v27, %v390_v62  ;;  %v1079_v16 = vshrl.u32 %v1901_v19, %v1070_v43  ;;  %v1081_v18 = vshll.u32 %v1901_v19, %v1069_v5 }
 0x12a   :  { %v1082_v20 = vshrl.u32 %v1902_v21, %v1070_v43  ;;  %vm319_vm13 = vcmp.eq.s32.totalorder %v2234_v40, 0  ;;  %v2251_v55 = vand.u32 3, %v1044_v39  ;;  %v2253_v33 = vshrl.u32 %v1067_v30, 5 }
 0x12b   :  { %v1035_v52 = vxor.u32 2147483648, %v1034_v59  ;;  %v2255_v45 = vmul.f32 30.0, %v157_v37  ;;  %vm318_vm14 = vcmp.lt.s32.totalorder %v2234_v40, 2  ;;  %v383_v22 = vadd.s32 %v2192_v42, %v2198_v50 }
 0x12c   :  { %v393_v23 = vsub.s32 0, %v2245_v57  ;;  %v1084_v54 = vshll.u32 %v1902_v21, %v1069_v5  ;;  %v2262_v35 = vshll.u32 %v1063_v53, 8  ;;  %vm315_vm15 = vweird.f32 %v2020_v31 }
 0x12d   :  { %v1036_v1 = vsel %vm953_vm6, %v1035_v52, %v1034_v59  ;;  %v1074_v26 = vor.u32 %v1073_v49, %v1072_v14  ;;  %v1077_v27 = vor.u32 %v1076_v3, %v1075_v46  ;;  %v1085_v63 = vshrl.u32 %v1903_v29, %v1070_v43 }
 0x12e   :  { %v1039_v6 = vsel %vm2185_vm8, %v2022_v32, %v1036_v1  ;;  %v1637_v42 = vmin.u32 %v393_v23, %v2245_v57  ;;  %v1080_v50 = vor.u32 %v1079_v16, %v1078_v60  ;;  %v1083_v28 = vor.u32 %v1082_v20, %v1081_v18 }
 0x12f   :  { %1834 = vcosq.f32 %v1039_v6  ;;  %v413_v30 = vsub.s32 4, %v2236_v41  ;;  %v1071_v13 = vshrl.u32 %v1898_v9, %v1070_v43  ;;  %vm1087_vm0 = vcmp.lt.s32.totalorder %v2253_v33, 1 }
 0x130   :  { %1836 = vsinq.f32 %v1039_v6  ;;  %vm329_vm2 = vcmp.lt.s32.totalorder %v2035_v48, 0  ;;  %v395_v4 = vclz %v1637_v42  ;;  %v1086_v34 = vor.u32 %v1085_v63, %v1084_v54 }
 0x131   :  { %v1831_v56 = vpop.eup %1830  ;;  %vm1088_vm3 = vcmp.lt.s32.totalorder %v2253_v33, 2  ;;  %vm1089_vm4 = vcmp.lt.s32.totalorder %v2253_v33, 3  ;;  %vm1090_vm5 = vcmp.lt.s32.totalorder %v2253_v33, 4  ;;  %v1095_v0 = vsel %vm1087_vm0, %v1074_v26, %v1077_v27 }
 0x132   :  { %v1833_v38 = vpop.eup %1832  ;;  %v323_v5 = vxor.u32 2147483648, %v1831_v56  ;;  %v1638_v37 = vadd.s32 4294967294, %v395_v4  ;;  %v1092_v43 = vsel %vm1090_vm5, %v1080_v50, 2102212464  ;;  %v1096_v44 = vsel %vm1090_vm5, %v1083_v28, 920167782 }
 0x133   :  { %v320_v2 = vxor.u32 2147483648, %v1833_v38  ;;  %vm2285_vm6 = vcmp.le.f32.partialorder %v327_v7, 0.7853982  ;;  %v1091_v62 = vsel %vm1087_vm0, %v1071_v13, %v1074_v26  ;;  %v1097_v53 = vsel %vm1089_vm4, %v1080_v50, %v1096_v44 }
 0x134   :  { %v324_v47 = vsel %vm322_vm12, %v323_v5, %v1833_v38  ;;  %v1099_v14 = vsel %vm1087_vm0, %v1077_v27, %v1080_v50  ;;  %vm1047_vm7 = vcmp.eq.s32.totalorder %v2251_v55, 0  ;;  %vm1639_vm8 = vcmp.lt.s32.totalorder %v1638_v37, 0 }
 0x135   :  { %v321_v46 = vsel %vm319_vm13, %v1831_v56, %v320_v2  ;;  %v1098_v7 = vsel %vm1088_vm3, %v1095_v0, %v1097_v53  ;;  %v1100_v59 = vsel %vm1090_vm5, %v1086_v34, 1326507024  ;;  %vm1046_vm9 = vcmp.lt.s32.totalorder %v2251_v55, 2 }
 0x136   :  { %v325_v49 = vsel %vm318_vm14, %v321_v46, %v324_v47  ;;  %v398_v3 = vsel %vm1639_vm8, 0, %v1638_v37  ;;  %v1093_v60 = vsel %vm1089_vm4, %v1077_v27, %v1092_v43  ;;  %v1101_v16 = vsel %vm1089_vm4, %v1083_v28, %v1100_v59 }
 0x137   :  { %v326_v18 = vsel %vm315_vm15, nan, %v325_v49  ;;  %vm1043_vm10 = vweird.f32 %v2022_v32  ;;  %v399_v20 = vsub.s32 32, %v398_v3  ;;  %v400_v52 = vshll.u32 %v2245_v57, %v398_v3 }
 0x138   :  { %v403_v23 = vsub.s32 4294967266, %v398_v3  ;;  %v1575_v40 = vmul.f32 0.5, %v326_v18  ;;  %v1102_v54 = vsel %vm1088_vm3, %v1099_v14, %v1101_v16  ;;  %vm1050_vm11 = vcmp.eq.s32.totalorder %v2251_v55, 2 }
 0x139   :  { %v2314_v1 = vmul.u32.u64.low %v2262_v35, %v1098_v7  ;;  %v2315_v26 = vmul.u32.u64.high %v2262_v35, %v1098_v7, %v2314_v1  ;;  %v401_v27 = vshrl.u32 %v383_v22, %v399_v20  ;;  %v1835_v42 = vpop.eup %1834  ;;  %v414_v57 = vsel %vm329_vm2, %v413_v30, %v2236_v41  ;;  %v2337_v30 = vpop.f32.mrb[10].mxu0 }
 0x13a   :  { %v404_v63 = vadd.s32 127, %v403_v23  ;;  %v2318_v6 = vmul.u32.u64.low %v2262_v35, %v1102_v54  ;;  %v2319_v31 = vmul.u32.u64.high %v2262_v35, %v1102_v54, %v2318_v6  ;;  %v1588_v50 = vadd.f32 %v1575_v40, %v1947_v11  ;;  %v1837_v13 = vpop.eup %1836  ;;  %v1732_v43 = vpop.f32.mrb[11].mxu0 }
 0x13b   :  { %v434_v28 = vand.u32 2139095040, %v2255_v45  ;;  %v1051_v56 = vxor.u32 2147483648, %v1835_v42  ;;  %v402_v4 = vor.u32 %v401_v27, %v400_v52  ;;  %v1094_v34 = vsel %vm1088_vm3, %v1091_v62, %v1093_v60 }
 0x13c   :  { %v405_v22 = vshll.u32 %v404_v63, 23  ;;  %1601 = vst.msk [vmem:[%s3148_s3] sm:$0xff] %vm40_vm1, %v1588_v50  ;;  %v1048_v11 = vxor.u32 2147483648, %v1837_v13  ;;  %v1113_v38 = vadd.s32 1, %v2315_v26  ;;  %v2335_v41 = vmul.f32 30.0, %v2232_v25 }
 0x13d   :  { %v435_v5 = vshrl.u32 %v434_v28, 23  ;;  %v1052_v0 = vsel %vm1050_vm11, %v1051_v56, %v1837_v13  ;;  %v416_v33 = vsel %vm2285_vm6, 0, %v414_v57  ;;  %v431_v37 = vand.u32 2147483647, %v2255_v45 }
 0x13e   :  { %v406_v2 = vor.u32 4788187, %v405_v22  ;;  %v1049_v44 = vsel %vm1047_vm7, %v1835_v42, %v1048_v11  ;;  %v1110_v47 = vmul.u32 %v2262_v35, %v1094_v34  ;;  %vm1112_vm12 = vc.u32 %v2319_v31, %v2314_v1 }
 0x13f   :  { %v1640_v25 = vadd.s32 4294967169, %v435_v5  ;;  %v1053_v62 = vsel %vm1046_vm9, %v1049_v44, %v1052_v0  ;;  %v409_v14 = vcvt.s32.f32 %v402_v4  ;;  %v1114_v46 = vsel %vm1112_vm12, %v1113_v38, %v2315_v26 }
 0x140   :  { %v407_v53 = vand.u32 2147483647, %v406_v2  ;;  %v1054_v7 = vsel %vm1043_vm10, nan, %v1053_v62  ;;  %v1115_v59 = vadd.s32 %v1114_v46, %v1110_v47  ;;  %v420_v16 = vadd.s32 3, %v416_v33 }
 0x141   :  { %v441_v49 = vadd.s32 1, %v1640_v25  ;;  %v1582_v3 = vmul.f32 0.5, %v1054_v7  ;;  %v438_v35 = vand.u32 8388607, %v431_v37  ;;  %v1162_v23 = vand.u32 2139095040, %v2335_v41 }
 0x142   :  { %v410_v60 = vmul.f32 %v409_v14, %v407_v53  ;;  %v1116_v18 = vadd.s32 536870912, %v1115_v59  ;;  %v2363_v26 = vand.u32 3, %v420_v16  ;;  %vm1057_vm14 = vcmp.lt.s32.totalorder %v2120_v8, 0 }
 0x143   :  { %vm442_vm13 = vcmp.gt.s32.totalorder %v441_v49, 0  ;;  %v1595_v55 = vadd.f32 %v1582_v3, %v1952_v12  ;;  %v1159_v12 = vand.u32 2147483647, %v2335_v41  ;;  %v439_v6 = vor.u32 8388608, %v438_v35 }
 0x144   :  { %v411_v20 = vxor.u32 2147483648, %v410_v60  ;;  %v443_v52 = vsel %vm442_vm13, %v441_v49, 0  ;;  %v1117_v40 = vshrl.u32 %v1116_v18, 30  ;;  %v2371_v50 = vadd.s32 %v2314_v1, %v2319_v31 }
 0x145   :  { %v445_v54 = vand.u32 31, %v443_v52  ;;  %1608 = vst.msk [vmem:[%s3148_s3 + $0x38] sm:$0xff] %vm40_vm1, %v1595_v55  ;;  %v1163_v28 = vshrl.u32 %v1162_v23, 23  ;;  %v444_v31 = vshrl.u32 %v443_v52, 5  ;;  %vm426_vm15 = vcmp.eq.s32.totalorder %v2363_v26, 2 }
 0x146   :  { %v412_v32 = vsel %vm329_vm2, %v411_v20, %v410_v60  ;;  %v1118_v63 = vshll.u32 %v1117_v40, 30  ;;  %v1141_v57 = vsub.s32 4, %v1117_v40  ;;  %v2385_v43 = vshll.u32 %v439_v6, 8 }
 0x147   :  { %v415_v27 = vsel %vm2285_vm6, %v2035_v48, %v412_v32  ;;  %v446_v42 = vsub.s32 32, %v445_v54  ;;  %v448_v56 = vshll.u32 %v1898_v9, %v445_v54  ;;  %v451_v4 = vshll.u32 %v1899_v15, %v445_v54 }
 0x148   :  { %1838 = vcosq.f32 %v415_v27  ;;  %v2373_v13 = vsub.s32 %v1115_v59, %v1118_v63  ;;  %v454_v34 = vshll.u32 %v1900_v17, %v445_v54  ;;  %v457_v38 = vshll.u32 %v1901_v19, %v445_v54 }
 0x149   :  { %1840 = vsinq.f32 %v415_v27  ;;  %v449_v22 = vshrl.u32 %v1899_v15, %v446_v42  ;;  %v452_v39 = vshrl.u32 %v1900_v17, %v446_v42  ;;  %v455_v11 = vshrl.u32 %v1901_v19, %v446_v42 }
 0x14a   :  { %v1121_v1 = vsub.s32 0, %v2373_v13  ;;  %v458_v5 = vshrl.u32 %v1902_v21, %v446_v42  ;;  %vm423_vm0 = vcmp.eq.s32.totalorder %v2363_v26, 0  ;;  %v461_v25 = vshrl.u32 %v1903_v29, %v446_v42 }
 0x14b   :  { %v450_v0 = vor.u32 %v449_v22, %v448_v56  ;;  %v453_v2 = vor.u32 %v452_v39, %v451_v4  ;;  %v456_v33 = vor.u32 %v455_v11, %v454_v34  ;;  %v2392_v62 = vand.u32 8388607, %v1159_v12 }
 0x14c   :  { %v1665_v44 = vmin.u32 %v1121_v1, %v2373_v13  ;;  %v459_v47 = vor.u32 %v458_v5, %v457_v38  ;;  %vm422_vm2 = vcmp.lt.s32.totalorder %v2363_v26, 2  ;;  %v2397_v53 = vsel %vm1057_vm14, %v1141_v57, %v1117_v40 }
 0x14d   :  { %v447_v14 = vshrl.u32 %v1898_v9, %v446_v42  ;;  %v460_v46 = vshll.u32 %v1902_v21, %v445_v54  ;;  %v1668_v7 = vadd.s32 4294967169, %v1163_v28  ;;  %vm419_vm3 = vweird.f32 %v2035_v48  ;;  %v2411_v42 = vpop.f32.mrb[10].mxu1 }
 0x14e   :  { %v1123_v59 = vclz %v1665_v44  ;;  %vm463_vm4 = vcmp.lt.s32.totalorder %v444_v31, 1  ;;  %vm465_vm5 = vcmp.lt.s32.totalorder %v444_v31, 3  ;;  %vm466_vm6 = vcmp.lt.s32.totalorder %v444_v31, 4  ;;  %v1753_v22 = vpop.f32.mrb[11].mxu1 }
 0x14f   :  { %v462_v49 = vor.u32 %v461_v25, %v460_v46  ;;  %v467_v3 = vsel %vm463_vm4, %v447_v14, %v450_v0  ;;  %v468_v60 = vsel %vm466_vm6, %v456_v33, 2102212464  ;;  %v471_v16 = vsel %vm463_vm4, %v450_v0, %v453_v2 }
 0x150   :  { %vm2404_vm7 = vcmp.le.f32.partialorder %v1055_v51, 0.7853982  ;;  %v1666_v35 = vadd.s32 4294967294, %v1123_v59  ;;  %v469_v55 = vsel %vm465_vm5, %v453_v2, %v468_v60  ;;  %v472_v20 = vsel %vm466_vm6, %v459_v47, 920167782  ;;  %v1882_v60 = vld [vmem:[%s3146_s0 + $0x8] sm:$0xff] }
 0x151   :  { %v475_v52 = vsel %vm463_vm4, %v453_v2, %v456_v33  ;;  %vm464_vm8 = vcmp.lt.s32.totalorder %v444_v31, 2  ;;  %v473_v40 = vsel %vm465_vm5, %v456_v33, %v472_v20  ;;  %v476_v54 = vsel %vm466_vm6, %v462_v49, 1326507024 }
 0x152   :  { %v1839_v23 = vpop.eup %1838  ;;  %v1169_v32 = vadd.s32 1, %v1668_v7  ;;  %vm1667_vm9 = vcmp.lt.s32.totalorder %v1666_v35, 0  ;;  %v470_v6 = vsel %vm464_vm8, %v467_v3, %v469_v55  ;;  %v477_v51 = vsel %vm465_vm5, %v459_v47, %v476_v54 }
 0x153   :  { %v1841_v27 = vpop.eup %1840  ;;  %v427_v63 = vxor.u32 2147483648, %v1839_v23  ;;  %v1126_v28 = vsel %vm1667_vm9, 0, %v1666_v35  ;;  %v474_v56 = vsel %vm464_vm8, %v471_v16, %v473_v40  ;;  %v478_v4 = vsel %vm464_vm8, %v475_v52, %v477_v51 }
 0x154   :  { %v424_v57 = vxor.u32 2147483648, %v1841_v27  ;;  %v1127_v34 = vsub.s32 32, %v1126_v28  ;;  %v1128_v11 = vshll.u32 %v2373_v13, %v1126_v28  ;;  %v1131_v1 = vsub.s32 4294967266, %v1126_v28 }
 0x155   :  { %v428_v39 = vsel %vm426_vm15, %v427_v63, %v1841_v27  ;;  %v2419_v31 = vmul.u32.u64.low %v2385_v43, %v478_v4  ;;  %v2420_v5 = vmul.u32.u64.high %v2385_v43, %v478_v4, %v2419_v31  ;;  %vm1170_vm10 = vcmp.gt.s32.totalorder %v1169_v32, 0 }
 0x156   :  { %v425_v38 = vsel %vm423_vm0, %v1839_v23, %v424_v57  ;;  %v1129_v2 = vshrl.u32 %v2371_v50, %v1127_v34  ;;  %v1132_v33 = vadd.s32 127, %v1131_v1  ;;  %v1171_v44 = vsel %vm1170_vm10, %v1169_v32, 0 }
 0x157   :  { %v429_v0 = vsel %vm422_vm2, %v425_v38, %v428_v39  ;;  %v2428_v13 = vmul.u32.u64.low %v2385_v43, %v474_v56  ;;  %v2429_v25 = vmul.u32.u64.high %v2385_v43, %v474_v56, %v2428_v13  ;;  %v162_v14 = vadd.f32 %v2016_v24, %v2040_v58 }
 0x158   :  { %v430_v47 = vsel %vm419_vm3, nan, %v429_v0  ;;  %v1130_v7 = vor.u32 %v1129_v2, %v1128_v11  ;;  %v1133_v59 = vshll.u32 %v1132_v33, 23  ;;  %v1173_v26 = vand.u32 31, %v1171_v44 }
 0x159   :  { %v1576_v46 = vmul.f32 0.5, %v430_v47  ;;  %v1144_v50 = vsel %vm2404_vm7, 0, %v2397_v53  ;;  %v486_v49 = vmul.u32 %v2385_v43, %v470_v6  ;;  %v1167_v48 = vor.u32 8388608, %v2392_v62 }
 0x15a   :  { %v2439_v3 = vshrl.u32 %v1171_v44, 5  ;;  %v1134_v24 = vor.u32 4788187, %v1133_v59  ;;  %vm488_vm11 = vc.u32 %v2420_v5, %v2428_v13  ;;  %v1174_v58 = vsub.s32 32, %v1173_v26 }
 0x15b   :  { %v1589_v16 = vadd.f32 %v1882_v60, %v1576_v46  ;;  %v489_v35 = vadd.s32 1, %v2429_v25  ;;  %v1176_v53 = vshll.u32 %v1898_v9, %v1173_v26  ;;  %v1179_v43 = vshll.u32 %v1899_v15, %v1173_v26 }
 0x15c   :  { %v1182_v62 = vshll.u32 %v1900_v17, %v1173_v26  ;;  %v1135_v55 = vand.u32 2147483647, %v1134_v24  ;;  %v1137_v20 = vcvt.s32.f32 %v1130_v7  ;;  %v1177_v52 = vshrl.u32 %v1899_v15, %v1174_v58 }
 0x15d   :  { %1602 = vst.msk [vmem:[%s3148_s3 + $0x8] sm:$0xff] %vm40_vm1, %v1589_v16  ;;  %v1180_v23 = vshrl.u32 %v1900_v17, %v1174_v58  ;;  %v490_v40 = vsel %vm488_vm11, %v489_v35, %v2429_v25  ;;  %v1183_v54 = vshrl.u32 %v1901_v19, %v1174_v58  ;;  %v1185_v32 = vshll.u32 %v1901_v19, %v1173_v26 }
 0x15e   :  { %v1186_v27 = vshrl.u32 %v1902_v21, %v1174_v58  ;;  %v1138_v63 = vmul.f32 %v1137_v20, %v1135_v55  ;;  %v491_v6 = vadd.s32 %v490_v40, %v486_v49  ;;  %v1178_v51 = vor.u32 %v1177_v52, %v1176_v53 }
 0x15f   :  { %v1181_v57 = vor.u32 %v1180_v23, %v1179_v43  ;;  %v1184_v28 = vor.u32 %v1183_v54, %v1182_v62  ;;  %v1188_v4 = vshll.u32 %v1902_v21, %v1173_v26  ;;  %v1189_v22 = vshrl.u32 %v1903_v29, %v1174_v58 }
 0x160   :  { %v1187_v56 = vor.u32 %v1186_v27, %v1185_v32  ;;  %v1139_v39 = vxor.u32 2147483648, %v1138_v63  ;;  %v1148_v34 = vadd.s32 3, %v1144_v50  ;;  %v492_v11 = vadd.s32 536870912, %v491_v6 }
 0x161   :  { %vm1191_vm12 = vcmp.lt.s32.totalorder %v2439_v3, 1  ;;  %v1175_v1 = vshrl.u32 %v1898_v9, %v1174_v58  ;;  %v1190_v38 = vor.u32 %v1189_v22, %v1188_v4  ;;  %vm1194_vm13 = vcmp.lt.s32.totalorder %v2439_v3, 4 }
 0x162   :  { %v1199_v31 = vsel %vm1191_vm12, %v1178_v51, %v1181_v57  ;;  %v1140_v0 = vsel %vm1057_vm14, %v1139_v39, %v1138_v63  ;;  %v493_v2 = vshrl.u32 %v492_v11, 30  ;;  %vm1193_vm15 = vcmp.lt.s32.totalorder %v2439_v3, 3  ;;  %v2513_v63 = vld [vmem:[%s3147_s2] ss:$0 sm:$0xff] }
 0x163   :  { %v1200_v33 = vsel %vm1194_vm13, %v1187_v56, 920167782  ;;  %v1143_v44 = vsel %vm2404_vm7, %v2120_v8, %v1140_v0  ;;  %vm1192_vm0 = vcmp.lt.s32.totalorder %v2439_v3, 2  ;;  %v1196_v47 = vsel %vm1194_vm13, %v1184_v28, 2102212464 }
 0x164   :  { %v1201_v25 = vsel %vm1193_vm15, %v1184_v28, %v1200_v33  ;;  %1842 = vcosq.f32 %v1143_v44  ;;  %v494_v46 = vshll.u32 %v493_v2, 30  ;;  %v1203_v59 = vsel %vm1191_vm12, %v1181_v57, %v1184_v28 }
 0x165   :  { %v1202_v7 = vsel %vm1192_vm0, %v1199_v31, %v1201_v25  ;;  %1844 = vsinq.f32 %v1143_v44  ;;  %v1204_v26 = vsel %vm1194_vm13, %v1190_v38, 1326507024  ;;  %v1207_v50 = vshll.u32 %v1167_v48, 8  ;;  %v2534_v25 = vpop.f32.mrb[12].mxu0 }
 0x166   :  { %v2480_v49 = vmul.f32 30.0, %v162_v14  ;;  %v2482_v18 = vsub.s32 %v491_v6, %v494_v46  ;;  %v517_v60 = vsub.s32 4, %v493_v2  ;;  %v1195_v16 = vsel %vm1191_vm12, %v1175_v1, %v1178_v51 }
 0x167   :  { %v1205_v24 = vsel %vm1193_vm15, %v1187_v56, %v1204_v26  ;;  %v1197_v58 = vsel %vm1193_vm15, %v1181_v57, %v1196_v47  ;;  %v2492_v53 = vmul.u32.u64.low %v1207_v50, %v1202_v7  ;;  %v2493_v43 = vmul.u32.u64.high %v1207_v50, %v1202_v7, %v2492_v53 }
 0x168   :  { %v1206_v35 = vsel %vm1192_vm0, %v1203_v59, %v1205_v24  ;;  %v1149_v14 = vand.u32 3, %v1148_v34  ;;  %v497_v48 = vsub.s32 0, %v2482_v18  ;;  %vm433_vm14 = vcmp.lt.s32.totalorder %v2255_v45, 0 }
 0x169   :  { %v2497_v62 = vmul.u32.u64.low %v1207_v50, %v1206_v35  ;;  %v2498_v55 = vmul.u32.u64.high %v1207_v50, %v1206_v35, %v2497_v62  ;;  %v538_v20 = vand.u32 2139095040, %v2480_v49  ;;  %v518_v23 = vsel %vm433_vm14, %v517_v60, %v493_v2 }
 0x16a   :  { %v1641_v52 = vmin.u32 %v497_v48, %v2482_v18  ;;  %v1198_v40 = vsel %vm1192_vm0, %v1195_v16, %v1197_v58  ;;  %v535_v54 = vand.u32 2147483647, %v2480_v49  ;;  %vm1147_vm2 = vweird.f32 %v2120_v8 }
 0x16b   :  { %v1217_v32 = vadd.s32 1, %v2493_v43  ;;  %v539_v27 = vshrl.u32 %v538_v20, 23  ;;  %v197_v6 = vadd.f32 %v2513_v63, %v2042_v61  ;;  %vm1150_vm3 = vcmp.lt.s32.totalorder %v1149_v14, 2 }
 0x16c   :  { %vm1151_vm4 = vcmp.eq.s32.totalorder %v1149_v14, 0  ;;  %vm2519_vm5 = vcmp.le.f32.partialorder %v431_v37, 0.7853982  ;;  %v499_v51 = vclz %v1641_v52  ;;  %v1214_v28 = vmul.u32 %v1207_v50, %v1198_v40  ;;  %v1735_v50 = vpop.f32.mrb[13].mxu0 }
 0x16d   :  { %v520_v57 = vsel %vm2519_vm5, 0, %v518_v23  ;;  %vm1216_vm6 = vc.u32 %v2498_v55, %v2492_v53  ;;  %v1644_v56 = vadd.s32 4294967169, %v539_v27  ;;  %vm1154_vm7 = vcmp.eq.s32.totalorder %v1149_v14, 2  ;;  %v1884_v14 = vld [vmem:[%s3146_s0 + $0x40] sm:$0xff] }
 0x16e   :  { %v1843_v4 = vpop.eup %1842  ;;  %v1642_v61 = vadd.s32 4294967294, %v499_v51  ;;  %v1218_v22 = vsel %vm1216_vm6, %v1217_v32, %v2493_v43  ;;  %v542_v37 = vand.u32 8388607, %v535_v54  ;;  %v2530_v38 = vmul.f32 30.0, %v197_v6 }
 0x16f   :  { %v1845_v39 = vpop.eup %1844  ;;  %v1155_v34 = vxor.u32 2147483648, %v1843_v4  ;;  %v1219_v11 = vadd.s32 %v1218_v22, %v1214_v28  ;;  %v545_v1 = vadd.s32 1, %v1644_v56  ;;  %v487_v0 = vadd.s32 %v2428_v13, %v2420_v5 }
 0x170   :  { %v1152_v31 = vxor.u32 2147483648, %v1845_v39  ;;  %vm1643_vm8 = vcmp.lt.s32.totalorder %v1642_v61, 0  ;;  %v524_v2 = vadd.s32 3, %v520_v57  ;;  %v543_v26 = vor.u32 8388608, %v542_v37 }
 0x171   :  { %v1156_v33 = vsel %vm1154_vm7, %v1155_v34, %v1845_v39  ;;  %v502_v44 = vsel %vm1643_vm8, 0, %v1642_v61  ;;  %v1220_v47 = vadd.s32 536870912, %v1219_v11  ;;  %vm546_vm9 = vcmp.gt.s32.totalorder %v545_v1, 0 }
 0x172   :  { %v1153_v46 = vsel %vm1151_vm4, %v1843_v4, %v1152_v31  ;;  %v503_v7 = vsub.s32 32, %v502_v44  ;;  %v507_v59 = vsub.s32 4294967266, %v502_v44  ;;  %v547_v24 = vsel %vm546_vm9, %v545_v1, 0 }
 0x173   :  { %v1157_v60 = vsel %vm1150_vm3, %v1153_v46, %v1156_v33  ;;  %v1221_v16 = vshrl.u32 %v1220_v47, 30  ;;  %v1266_v5 = vand.u32 2139095040, %v2530_v38  ;;  %v504_v58 = vshll.u32 %v2482_v18, %v502_v44 }
 0x174   :  { %v1158_v13 = vsel %vm1147_vm2, nan, %v1157_v60  ;;  %v505_v35 = vshrl.u32 %v487_v0, %v503_v7  ;;  %v508_v43 = vadd.s32 127, %v507_v59  ;;  %v2542_v20 = vshrl.u32 %v547_v24, 5 }
 0x175   :  { %v1583_v48 = vmul.f32 0.5, %v1158_v13  ;;  %v1222_v62 = vshll.u32 %v1221_v16, 30  ;;  %v549_v52 = vand.u32 31, %v547_v24  ;;  %vm1161_vm10 = vcmp.lt.s32.totalorder %v2335_v41, 0 }
 0x176   :  { %v506_v23 = vor.u32 %v505_v35, %v504_v58  ;;  %v509_v40 = vshll.u32 %v508_v43, 23  ;;  %v2548_v8 = vand.u32 3, %v524_v2  ;;  %v1215_v51 = vadd.s32 %v2492_v53, %v2498_v55 }
 0x177   :  { %v1596_v32 = vadd.f32 %v1884_v14, %v1583_v48  ;;  %v2550_v27 = vsub.s32 %v1219_v11, %v1222_v62  ;;  %v550_v18 = vsub.s32 32, %v549_v52  ;;  %v2554_v57 = vshll.u32 %v543_v26, 8 }
 0x178   :  { %v510_v6 = vor.u32 4788187, %v509_v40  ;;  %v1267_v28 = vshrl.u32 %v1266_v5, 23  ;;  %v1245_v4 = vsub.s32 4, %v1221_v16  ;;  %vm567_vm11 = vcmp.lt.s32.totalorder %v2542_v20, 1 }
 0x179   :  { %1609 = vst.msk [vmem:[%s3148_s3 + $0x40] sm:$0xff] %vm40_vm1, %v1596_v32  ;;  %v1225_v56 = vsub.s32 0, %v2550_v27  ;;  %v553_v61 = vshrl.u32 %v1899_v15, %v550_v18  ;;  %v513_v37 = vcvt.s32.f32 %v506_v23  ;;  %v552_v39 = vshll.u32 %v1898_v9, %v549_v52 }
 0x17a   :  { %v511_v22 = vand.u32 2147483647, %v510_v6  ;;  %v556_v53 = vshrl.u32 %v1900_v17, %v550_v18  ;;  %v555_v34 = vshll.u32 %v1899_v15, %v549_v52  ;;  %v558_v11 = vshll.u32 %v1900_v17, %v549_v52 }
 0x17b   :  { %v1669_v55 = vmin.u32 %v1225_v56, %v2550_v27  ;;  %v559_v1 = vshrl.u32 %v1901_v19, %v550_v18  ;;  %v554_v0 = vor.u32 %v553_v61, %v552_v39  ;;  %v561_v2 = vshll.u32 %v1901_v19, %v549_v52 }
 0x17c   :  { %v514_v31 = vmul.f32 %v513_v37, %v511_v22  ;;  %v562_v33 = vshrl.u32 %v1902_v21, %v550_v18  ;;  %v2573_v47 = vsel %vm1161_vm10, %v1245_v4, %v1221_v16  ;;  %v557_v46 = vor.u32 %v556_v53, %v555_v34 }
 0x17d   :  { %v1227_v44 = vclz %v1669_v55  ;;  %vm568_vm12 = vcmp.lt.s32.totalorder %v2542_v20, 2  ;;  %v551_v59 = vshrl.u32 %v1898_v9, %v550_v18  ;;  %v560_v26 = vor.u32 %v559_v1, %v558_v11 }
 0x17e   :  { %v515_v7 = vxor.u32 2147483648, %v514_v31  ;;  %v563_v50 = vor.u32 %v562_v33, %v561_v2  ;;  %v564_v24 = vshll.u32 %v1902_v21, %v549_v52  ;;  %v565_v5 = vshrl.u32 %v1903_v29, %v550_v18 }
 0x17f   :  { %v1670_v60 = vadd.s32 4294967294, %v1227_v44  ;;  %vm570_vm13 = vcmp.lt.s32.totalorder %v2542_v20, 4  ;;  %vm569_vm15 = vcmp.lt.s32.totalorder %v2542_v20, 3  ;;  %v571_v16 = vsel %vm567_vm11, %v551_v59, %v554_v0 }
 0x180   :  { %v516_v13 = vsel %vm433_vm14, %v515_v7, %v514_v31  ;;  %v572_v58 = vsel %vm570_vm13, %v560_v26, 2102212464  ;;  %v566_v43 = vor.u32 %v565_v5, %v564_v24  ;;  %v575_v52 = vsel %vm567_vm11, %v554_v0, %v557_v46 }
 0x181   :  { %v519_v35 = vsel %vm2519_vm5, %v2255_v45, %v516_v13  ;;  %vm1671_vm0 = vcmp.lt.s32.totalorder %v1670_v60, 0  ;;  %v573_v48 = vsel %vm569_vm15, %v557_v46, %v572_v58  ;;  %v576_v23 = vsel %vm570_vm13, %v563_v50, 920167782 }
 0x182   :  { %1846 = vcosq.f32 %v519_v35  ;;  %v1230_v62 = vsel %vm1671_vm0, 0, %v1670_v60  ;;  %v574_v3 = vsel %vm568_vm12, %v571_v16, %v573_v48  ;;  %v577_v18 = vsel %vm569_vm15, %v560_v26, %v576_v23 }
 0x183   :  { %1848 = vsinq.f32 %v519_v35  ;;  %v1231_v40 = vsub.s32 32, %v1230_v62  ;;  %v1235_v14 = vsub.s32 4294967266, %v1230_v62  ;;  %v1232_v32 = vshll.u32 %v2550_v27, %v1230_v62 }
 0x184   :  { %v579_v6 = vsel %vm567_vm11, %v557_v46, %v560_v26  ;;  %v580_v56 = vsel %vm570_vm13, %v566_v43, 1326507024  ;;  %v578_v22 = vsel %vm568_vm12, %v575_v52, %v577_v18  ;;  %v1672_v55 = vadd.s32 4294967169, %v1267_v28 }
 0x185   :  { %v1233_v4 = vshrl.u32 %v1215_v51, %v1231_v40  ;;  %v1236_v61 = vadd.s32 127, %v1235_v14  ;;  %v581_v37 = vsel %vm569_vm15, %v563_v50, %v580_v56  ;;  %vm2622_vm14 = vcmp.le.f32.partialorder %v1159_v12, 0.7853982 }
 0x186   :  { %v582_v27 = vsel %vm568_vm12, %v579_v6, %v581_v37  ;;  %v2612_v39 = vmul.u32.u64.low %v2554_v57, %v578_v22  ;;  %v2613_v53 = vmul.u32.u64.high %v2554_v57, %v578_v22, %v2612_v39  ;;  %v1273_v20 = vadd.s32 1, %v1672_v55 }
 0x187   :  { %v1234_v34 = vor.u32 %v1233_v4, %v1232_v32  ;;  %v1237_v11 = vshll.u32 %v1236_v61, 23  ;;  %v2617_v51 = vmul.u32.u64.low %v2554_v57, %v582_v27  ;;  %v2618_v1 = vmul.u32.u64.high %v2554_v57, %v582_v27, %v2617_v51 }
 0x188   :  { %vm523_vm2 = vweird.f32 %v2255_v45  ;;  %vm526_vm3 = vcmp.lt.s32.totalorder %v2548_v8, 2  ;;  %v1263_v28 = vand.u32 2147483647, %v2530_v38  ;;  %v167_v2 = vadd.f32 %v2513_v63, %v2122_v10  ;;  %v1885_v45 = vld [vmem:[%s3146_s0 + $0x10] sm:$0xff] }
 0x189   :  { %v1238_v0 = vor.u32 4788187, %v1237_v11  ;;  %v1248_v33 = vsel %vm2622_vm14, 0, %v2573_v47  ;;  %v590_v12 = vmul.u32 %v2554_v57, %v574_v3  ;;  %v593_v44 = vadd.s32 1, %v2613_v53 }
 0x18a   :  { %vm1274_vm4 = vcmp.gt.s32.totalorder %v1273_v20, 0  ;;  %v1241_v7 = vcvt.s32.f32 %v1234_v34  ;;  %vm592_vm5 = vc.u32 %v2618_v1, %v2612_v39  ;;  %vm527_vm6 = vcmp.eq.s32.totalorder %v2548_v8, 0 }
 0x18b   :  { %v1239_v46 = vand.u32 2147483647, %v1238_v0  ;;  %v1275_v59 = vsel %vm1274_vm4, %v1273_v20, 0  ;;  %vm530_vm7 = vcmp.eq.s32.totalorder %v2548_v8, 2  ;;  %v594_v10 = vsel %vm592_vm5, %v593_v44, %v2613_v53 }
 0x18c   :  { %v1847_v26 = vpop.eup %1846  ;;  %v1277_v50 = vand.u32 31, %v1275_v59  ;;  %v595_v24 = vadd.s32 %v594_v10, %v590_v12  ;;  %v1270_v5 = vand.u32 8388607, %v1263_v28  ;;  %v1252_v16 = vadd.s32 3, %v1248_v33 }
 0x18d   :  { %v1849_v47 = vpop.eup %1848  ;;  %v531_v60 = vxor.u32 2147483648, %v1847_v26  ;;  %v1242_v57 = vmul.f32 %v1241_v7, %v1239_v46  ;;  %v1276_v37 = vshrl.u32 %v1275_v59, 5  ;;  %vm537_vm9 = vcmp.lt.s32.totalorder %v2480_v49, 0 }
 0x18e   :  { %v528_v13 = vxor.u32 2147483648, %v1849_v47  ;;  %v1278_v58 = vsub.s32 32, %v1277_v50  ;;  %v1280_v35 = vshll.u32 %v1898_v9, %v1277_v50  ;;  %v596_v62 = vadd.s32 536870912, %v595_v24 }
 0x18f   :  { %v532_v43 = vsel %vm530_vm7, %v531_v60, %v1849_v47  ;;  %v1243_v48 = vxor.u32 2147483648, %v1242_v57  ;;  %v1283_v52 = vshll.u32 %v1899_v15, %v1277_v50  ;;  %v1286_v3 = vshll.u32 %v1900_v17, %v1277_v50 }
 0x190   :  { %v529_v23 = vsel %vm527_vm6, %v1847_v26, %v528_v13  ;;  %v1281_v40 = vshrl.u32 %v1899_v15, %v1278_v58  ;;  %v1284_v14 = vshrl.u32 %v1900_v17, %v1278_v58  ;;  %v2654_v6 = vshrl.u32 %v596_v62, 30 }
 0x191   :  { %v533_v32 = vsel %vm526_vm3, %v529_v23, %v532_v43  ;;  %v1244_v18 = vsel %vm1161_vm10, %v1243_v48, %v1242_v57  ;;  %v1287_v56 = vshrl.u32 %v1901_v19, %v1278_v58  ;;  %v2662_v22 = vand.u32 3, %v1252_v16 }
 0x192   :  { %v534_v4 = vsel %vm523_vm2, nan, %v533_v32  ;;  %v1247_v61 = vsel %vm2622_vm14, %v2335_v41, %v1244_v18  ;;  %v598_v8 = vshll.u32 %v2654_v6, 30  ;;  %v1282_v53 = vor.u32 %v1281_v40, %v1280_v35 }
 0x193   :  { %v1577_v27 = vmul.f32 0.5, %v534_v4  ;;  %1850 = vcosq.f32 %v1247_v61  ;;  %v1285_v55 = vor.u32 %v1284_v14, %v1283_v52  ;;  %v1289_v34 = vshll.u32 %v1901_v19, %v1277_v50 }
 0x194   :  { %1852 = vsinq.f32 %v1247_v61  ;;  %v1290_v11 = vshrl.u32 %v1902_v21, %v1278_v58  ;;  %v2670_v31 = vsub.s32 %v595_v24, %v598_v8  ;;  %v1288_v20 = vor.u32 %v1287_v56, %v1286_v3 }
 0x195   :  { %v1590_v51 = vadd.f32 %v1885_v45, %v1577_v27  ;;  %v1292_v0 = vshll.u32 %v1902_v21, %v1277_v50  ;;  %v1271_v33 = vor.u32 8388608, %v1270_v5  ;;  %v1293_v44 = vshrl.u32 %v1903_v29, %v1278_v58 }
 0x196   :  { %v1291_v12 = vor.u32 %v1290_v11, %v1289_v34  ;;  %vm1258_vm8 = vcmp.eq.s32.totalorder %v2662_v22, 2  ;;  %v601_v46 = vsub.s32 0, %v2670_v31  ;;  %v1279_v7 = vshrl.u32 %v1898_v9, %v1278_v58 }
 0x197   :  { %1603 = vst.msk [vmem:[%s3148_s3 + $0x10] sm:$0xff] %vm40_vm1, %v1590_v51  ;;  %v2682_v59 = vmul.f32 30.0, %v167_v2  ;;  %vm1255_vm10 = vcmp.eq.s32.totalorder %v2662_v22, 0  ;;  %v1294_v26 = vor.u32 %v1293_v44, %v1292_v0  ;;  %vm1295_vm11 = vcmp.lt.s32.totalorder %v1276_v37, 1 }
 0x198   :  { %vm1297_vm12 = vcmp.lt.s32.totalorder %v1276_v37, 3  ;;  %vm1298_vm13 = vcmp.lt.s32.totalorder %v1276_v37, 4  ;;  %vm1254_vm15 = vcmp.lt.s32.totalorder %v2662_v22, 2  ;;  %v1645_v10 = vmin.u32 %v601_v46, %v2670_v31 }
 0x199   :  { %v1300_v50 = vsel %vm1298_vm13, %v1288_v20, 2102212464  ;;  %v1303_v47 = vsel %vm1295_vm11, %v1282_v53, %v1285_v55  ;;  %v1304_v60 = vsel %vm1298_vm13, %v1291_v12, 920167782  ;;  %vm1251_vm0 = vweird.f32 %v2335_v41  ;;  %v1886_v41 = vld [vmem:[%s3146_s0 + $0x48] sm:$0xff] }
 0x19a   :  { %v1305_v57 = vsel %vm1297_vm12, %v1288_v20, %v1304_v60  ;;  %v1307_v2 = vsel %vm1295_vm11, %v1285_v55, %v1288_v20  ;;  %v1308_v24 = vsel %vm1298_vm13, %v1294_v26, 1326507024  ;;  %v1311_v5 = vshll.u32 %v1271_v33, 8 }
 0x19b   :  { %vm2693_vm14 = vcmp.le.f32.partialorder %v535_v54, 0.7853982  ;;  %v603_v16 = vclz %v1645_v10  ;;  %vm1296_vm2 = vcmp.lt.s32.totalorder %v1276_v37, 2  ;;  %v1299_v58 = vsel %vm1295_vm11, %v1279_v7, %v1282_v53 }
 0x19c   :  { %v1301_v35 = vsel %vm1297_vm12, %v1285_v55, %v1300_v50  ;;  %v621_v43 = vsub.s32 4, %v2654_v6  ;;  %v1306_v48 = vsel %vm1296_vm2, %v1303_v47, %v1305_v57  ;;  %v1309_v62 = vsel %vm1297_vm12, %v1291_v12, %v1308_v24 }
 0x19d   :  { %v642_v52 = vand.u32 2139095040, %v2682_v59  ;;  %v1851_v23 = vpop.eup %1850  ;;  %v1646_v40 = vadd.s32 4294967294, %v603_v16  ;;  %v1310_v14 = vsel %vm1296_vm2, %v1307_v2, %v1309_v62  ;;  %v1302_v56 = vsel %vm1296_vm2, %v1299_v58, %v1301_v35 }
 0x19e   :  { %v2702_v54 = vmul.u32.u64.low %v1311_v5, %v1306_v48  ;;  %v2703_v3 = vmul.u32.u64.high %v1311_v5, %v1306_v48, %v2702_v54  ;;  %v1853_v32 = vpop.eup %1852  ;;  %v1259_v18 = vxor.u32 2147483648, %v1851_v23  ;;  %v202_v37 = vadd.f32 %v2513_v63, %v2217_v36 }
 0x19f   :  { %v2706_v4 = vmul.u32.u64.low %v1311_v5, %v1310_v14  ;;  %v2707_v61 = vmul.u32.u64.high %v1311_v5, %v1310_v14, %v2706_v4  ;;  %v1256_v27 = vxor.u32 2147483648, %v1853_v32  ;;  %vm1647_vm3 = vcmp.lt.s32.totalorder %v1646_v40, 0 }
 0x1a0   :  { %v643_v8 = vshrl.u32 %v642_v52, 23  ;;  %v1260_v53 = vsel %vm1258_vm8, %v1259_v18, %v1853_v32  ;;  %v591_v55 = vadd.s32 %v2612_v39, %v2618_v1  ;;  %v606_v34 = vsel %vm1647_vm3, 0, %v1646_v40 }
 0x1a1   :  { %v622_v11 = vsel %vm537_vm9, %v621_v43, %v2654_v6  ;;  %v1257_v45 = vsel %vm1255_vm10, %v1851_v23, %v1256_v27  ;;  %v607_v51 = vsub.s32 32, %v606_v34  ;;  %v611_v20 = vsub.s32 4294967266, %v606_v34 }
 0x1a2   :  { %v1318_v0 = vmul.u32 %v1311_v5, %v1302_v56  ;;  %v1261_v36 = vsel %vm1254_vm15, %v1257_v45, %v1260_v53  ;;  %v608_v33 = vshll.u32 %v2670_v31, %v606_v34  ;;  %vm1320_vm4 = vc.u32 %v2707_v61, %v2702_v54 }
 0x1a3   :  { %v1321_v39 = vadd.s32 1, %v2703_v3  ;;  %v1262_v1 = vsel %vm1251_vm0, nan, %v1261_v36  ;;  %v609_v6 = vshrl.u32 %v591_v55, %v607_v51  ;;  %v612_v12 = vadd.s32 127, %v611_v20 }
 0x1a4   :  { %v1648_v44 = vadd.s32 4294967169, %v643_v8  ;;  %v1584_v46 = vmul.f32 0.5, %v1262_v1  ;;  %v624_v7 = vsel %vm2693_vm14, 0, %v622_v11  ;;  %v639_v26 = vand.u32 2147483647, %v2682_v59 }
 0x1a5   :  { %v1322_v22 = vsel %vm1320_vm4, %v1321_v39, %v2703_v3  ;;  %v610_v31 = vor.u32 %v609_v6, %v608_v33  ;;  %v613_v10 = vshll.u32 %v612_v12, 23  ;;  %v628_v24 = vadd.s32 3, %v624_v7 }
 0x1a6   :  { %v1323_v50 = vadd.s32 %v1322_v22, %v1318_v0  ;;  %v649_v47 = vadd.s32 1, %v1648_v44  ;;  %v1597_v60 = vadd.f32 %v1886_v41, %v1584_v46  ;;  %v646_v5 = vand.u32 8388607, %v639_v26 }
 0x1a7   :  { %v614_v57 = vor.u32 4788187, %v613_v10  ;;  %v2741_v58 = vmul.f32 30.0, %v202_v37  ;;  %v617_v43 = vcvt.s32.f32 %v610_v31  ;;  %v2746_v14 = vand.u32 3, %v628_v24 }
 0x1a8   :  { %v1324_v2 = vadd.s32 536870912, %v1323_v50  ;;  %vm650_vm5 = vcmp.gt.s32.totalorder %v649_v47, 0  ;;  %1610 = vst.msk [vmem:[%s3148_s3 + $0x48] sm:$0xff] %vm40_vm1, %v1597_v60  ;;  %v647_v3 = vor.u32 8388608, %v646_v5  ;;  %v2750_v32 = vadd.f32 %v2513_v63, %v2337_v30 }
 0x1a9   :  { %v651_v16 = vsel %vm650_vm5, %v649_v47, 0  ;;  %v615_v35 = vand.u32 2147483647, %v614_v57  ;;  %v1370_v27 = vand.u32 2139095040, %v2741_v58  ;;  %v1319_v46 = vadd.s32 %v2702_v54, %v2707_v61 }
 0x1aa   :  { %v2743_v48 = vshrl.u32 %v1324_v2, 30  ;;  %v653_v62 = vand.u32 31, %v651_v16  ;;  %v652_v20 = vshrl.u32 %v651_v16, 5  ;;  %v2774_v7 = vshll.u32 %v647_v3, 8 }
 0x1ab   :  { %v618_v52 = vmul.f32 %v617_v43, %v615_v35  ;;  %v1371_v22 = vshrl.u32 %v1370_v27, 23  ;;  %vm1265_vm7 = vcmp.lt.s32.totalorder %v2530_v38, 0  ;;  %vm631_vm10 = vcmp.eq.s32.totalorder %v2746_v14, 0 }
 0x1ac   :  { %v1326_v23 = vshll.u32 %v2743_v48, 30  ;;  %v654_v40 = vsub.s32 32, %v653_v62  ;;  %v656_v4 = vshll.u32 %v1898_v9, %v653_v62  ;;  %v659_v37 = vshll.u32 %v1899_v15, %v653_v62 }
 0x1ad   :  { %v619_v18 = vxor.u32 2147483648, %v618_v52  ;;  %v662_v11 = vshll.u32 %v1900_v17, %v653_v62  ;;  %v665_v36 = vshll.u32 %v1901_v19, %v653_v62  ;;  %v668_v12 = vshll.u32 %v1902_v21, %v653_v62 }
 0x1ae   :  { %v2752_v56 = vsub.s32 %v1323_v50, %v1326_v23  ;;  %v657_v8 = vshrl.u32 %v1899_v15, %v654_v40  ;;  %v660_v53 = vshrl.u32 %v1900_v17, %v654_v40  ;;  %v663_v55 = vshrl.u32 %v1901_v19, %v654_v40 }
 0x1af   :  { %v620_v34 = vsel %vm537_vm9, %v619_v18, %v618_v52  ;;  %v666_v45 = vshrl.u32 %v1902_v21, %v654_v40  ;;  %v669_v44 = vshrl.u32 %v1903_v29, %v654_v40  ;;  %v1349_v31 = vsub.s32 4, %v2743_v48 }
 0x1b0   :  { %v1329_v30 = vsub.s32 0, %v2752_v56  ;;  %v623_v51 = vsel %vm2693_vm14, %v2480_v49, %v620_v34  ;;  %v658_v0 = vor.u32 %v657_v8, %v656_v4  ;;  %v661_v39 = vor.u32 %v660_v53, %v659_v37 }
 0x1b1   :  { %1854 = vcosq.f32 %v623_v51  ;;  %v664_v1 = vor.u32 %v663_v55, %v662_v11  ;;  %v667_v6 = vor.u32 %v666_v45, %v665_v36  ;;  %v655_v10 = vshrl.u32 %v1898_v9, %v654_v40 }
 0x1b2   :  { %v1673_v33 = vmin.u32 %v1329_v30, %v2752_v56  ;;  %1856 = vsinq.f32 %v623_v51  ;;  %v670_v50 = vor.u32 %v669_v44, %v668_v12  ;;  %vm671_vm6 = vcmp.lt.s32.totalorder %v652_v20, 1 }
 0x1b3   :  { %vm673_vm8 = vcmp.lt.s32.totalorder %v652_v20, 3  ;;  %vm674_vm9 = vcmp.lt.s32.totalorder %v652_v20, 4  ;;  %v679_v41 = vsel %vm671_vm6, %v658_v0, %v661_v39  ;;  %v683_v60 = vsel %vm671_vm6, %v661_v39, %v664_v1 }
 0x1b4   :  { %v1331_v13 = vclz %v1673_v33  ;;  %v676_v54 = vsel %vm674_vm9, %v664_v1, 2102212464  ;;  %v680_v61 = vsel %vm674_vm9, %v667_v6, 920167782  ;;  %v684_v57 = vsel %vm674_vm9, %v670_v50, 1326507024 }
 0x1b5   :  { %vm630_vm11 = vcmp.lt.s32.totalorder %v2746_v14, 2  ;;  %vm672_vm13 = vcmp.lt.s32.totalorder %v652_v20, 2  ;;  %v681_v2 = vsel %vm673_vm8, %v664_v1, %v680_v61  ;;  %v685_v24 = vsel %vm673_vm8, %v667_v6, %v684_v57 }
 0x1b6   :  { %v1674_v47 = vadd.s32 4294967294, %v1331_v13  ;;  %vm627_vm15 = vweird.f32 %v2480_v49  ;;  %v675_v16 = vsel %vm671_vm6, %v655_v10, %v658_v0  ;;  %v682_v35 = vsel %vm672_vm13, %v679_v41, %v681_v2  ;;  %v1887_v49 = vld [vmem:[%s3146_s0 + $0x18] sm:$0xff] }
 0x1b7   :  { %v686_v43 = vsel %vm672_vm13, %v683_v60, %v685_v24  ;;  %vm2791_vm0 = vcmp.le.f32.partialorder %v1263_v28, 0.7853982  ;;  %v677_v40 = vsel %vm673_vm8, %v661_v39, %v676_v54  ;;  %v1676_v3 = vadd.s32 4294967169, %v1371_v22 }
 0x1b8   :  { %vm1675_vm12 = vcmp.lt.s32.totalorder %v1674_v47, 0  ;;  %v2797_v18 = vmul.u32.u64.low %v2774_v7, %v686_v43  ;;  %v2798_v4 = vmul.u32.u64.high %v2774_v7, %v686_v43, %v2797_v18  ;;  %vm634_vm14 = vcmp.eq.s32.totalorder %v2746_v14, 2 }
 0x1b9   :  { %v1334_v5 = vsel %vm1675_vm12, 0, %v1674_v47  ;;  %v2801_v27 = vmul.u32.u64.low %v2774_v7, %v682_v35  ;;  %v2802_v8 = vmul.u32.u64.high %v2774_v7, %v682_v35, %v2801_v27  ;;  %v1377_v34 = vadd.s32 1, %v1676_v3 }
 0x1ba   :  { %v1335_v52 = vsub.s32 32, %v1334_v5  ;;  %v1339_v23 = vsub.s32 4294967266, %v1334_v5  ;;  %v1336_v28 = vshll.u32 %v2752_v56, %v1334_v5  ;;  %v678_v45 = vsel %vm672_vm13, %v675_v16, %v677_v40 }
 0x1bb   :  { %v1855_v37 = vpop.eup %1854  ;;  %v1367_v51 = vand.u32 2147483647, %v2741_v58  ;;  %vm1378_vm2 = vcmp.gt.s32.totalorder %v1377_v34, 0  ;;  %v1350_v56 = vsel %vm1265_vm7, %v1349_v31, %v2743_v48  ;;  %vm696_vm3 = vc.u32 %v2798_v4, %v2801_v27 }
 0x1bc   :  { %v1337_v53 = vshrl.u32 %v1319_v46, %v1335_v52  ;;  %v1340_v55 = vadd.s32 127, %v1339_v23  ;;  %v1857_v30 = vpop.eup %1856  ;;  %v635_v11 = vxor.u32 2147483648, %v1855_v37  ;;  %v697_v1 = vadd.s32 1, %v2802_v8 }
 0x1bd   :  { %v632_v0 = vxor.u32 2147483648, %v1857_v30  ;;  %v694_v12 = vmul.u32 %v2774_v7, %v678_v45  ;;  %v1379_v44 = vsel %vm1378_vm2, %v1377_v34, 0  ;;  %v1374_v48 = vand.u32 8388607, %v1367_v51 }
 0x1be   :  { %v1338_v36 = vor.u32 %v1337_v53, %v1336_v28  ;;  %v1341_v33 = vshll.u32 %v1340_v55, 23  ;;  %v636_v39 = vsel %vm634_vm14, %v635_v11, %v1857_v30  ;;  %v698_v13 = vsel %vm696_vm3, %v697_v1, %v2802_v8 }
 0x1bf   :  { %v633_v20 = vsel %vm631_vm10, %v1855_v37, %v632_v0  ;;  %v1381_v22 = vand.u32 31, %v1379_v44  ;;  %v699_v47 = vadd.s32 %v698_v13, %v694_v12  ;;  %v1352_v7 = vsel %vm2791_vm0, 0, %v1350_v56 }
 0x1c0   :  { %v1342_v6 = vor.u32 4788187, %v1341_v33  ;;  %v637_v46 = vsel %vm630_vm11, %v633_v20, %v636_v39  ;;  %v1345_v50 = vcvt.s32.f32 %v1338_v36  ;;  %v1356_v3 = vadd.s32 3, %v1352_v7 }
 0x1c1   :  { %v638_v31 = vsel %vm627_vm15, nan, %v637_v46  ;;  %v1382_v54 = vsub.s32 32, %v1381_v22  ;;  %v1384_v14 = vshll.u32 %v1898_v9, %v1381_v22  ;;  %v700_v60 = vadd.s32 536870912, %v699_v47 }
 0x1c2   :  { %v1343_v10 = vand.u32 2147483647, %v1342_v6  ;;  %v1578_v41 = vmul.f32 0.5, %v638_v31  ;;  %v1387_v57 = vshll.u32 %v1899_v15, %v1381_v22  ;;  %v1390_v2 = vshll.u32 %v1900_v17, %v1381_v22 }
 0x1c3   :  { %v1385_v5 = vshrl.u32 %v1899_v15, %v1382_v54  ;;  %v1388_v16 = vshrl.u32 %v1900_v17, %v1382_v54  ;;  %v1393_v35 = vshll.u32 %v1901_v19, %v1381_v22  ;;  %v701_v52 = vshrl.u32 %v700_v60, 30 }
 0x1c4   :  { %v1346_v61 = vmul.f32 %v1345_v50, %v1343_v10  ;;  %v1591_v24 = vadd.f32 %v1887_v49, %v1578_v41  ;;  %v1391_v23 = vshrl.u32 %v1901_v19, %v1382_v54  ;;  %v1394_v40 = vshrl.u32 %v1902_v21, %v1382_v54 }
 0x1c5   :  { %v1396_v18 = vshll.u32 %v1902_v21, %v1381_v22  ;;  %v1397_v8 = vshrl.u32 %v1903_v29, %v1382_v54  ;;  %v2845_v37 = vmul.f32 30.0, %v2750_v32  ;;  %v702_v53 = vshll.u32 %v701_v52, 30 }
 0x1c6   :  { %v1347_v43 = vxor.u32 2147483648, %v1346_v61  ;;  %1604 = vst.msk [vmem:[%s3148_s3 + $0x18] sm:$0xff] %vm40_vm1, %v1591_v24  ;;  %v1380_v55 = vshrl.u32 %v1379_v44, 5  ;;  %v1386_v34 = vor.u32 %v1385_v5, %v1384_v14  ;;  %v1389_v11 = vor.u32 %v1388_v16, %v1387_v57 }
 0x1c7   :  { %v1392_v45 = vor.u32 %v1391_v23, %v1390_v2  ;;  %v1395_v0 = vor.u32 %v1394_v40, %v1393_v35  ;;  %v2852_v36 = vsub.s32 %v699_v47, %v702_v53  ;;  %v1375_v33 = vor.u32 8388608, %v1374_v48 }
 0x1c8   :  { %v1348_v28 = vsel %vm1265_vm7, %v1347_v43, %v1346_v61  ;;  %v1357_v32 = vand.u32 3, %v1356_v3  ;;  %vm641_vm4 = vcmp.lt.s32.totalorder %v2682_v59, 0  ;;  %v1398_v39 = vor.u32 %v1397_v8, %v1396_v18 }
 0x1c9   :  { %v1351_v30 = vsel %vm2791_vm0, %v2530_v38, %v1348_v28  ;;  %v746_v56 = vand.u32 2139095040, %v2845_v37  ;;  %v705_v1 = vsub.s32 0, %v2852_v36  ;;  %v1383_v20 = vshrl.u32 %v1898_v9, %v1382_v54 }
 0x1ca   :  { %1858 = vcosq.f32 %v1351_v30  ;;  %vm1399_vm5 = vcmp.lt.s32.totalorder %v1380_v55, 1  ;;  %vm1402_vm6 = vcmp.lt.s32.totalorder %v1380_v55, 4  ;;  %vm1401_vm7 = vcmp.lt.s32.totalorder %v1380_v55, 3 }
 0x1cb   :  { %1860 = vsinq.f32 %v1351_v30  ;;  %v1404_v62 = vsel %vm1402_vm6, %v1392_v45, 2102212464  ;;  %v1407_v6 = vsel %vm1399_vm5, %v1386_v34, %v1389_v11  ;;  %v1408_v12 = vsel %vm1402_vm6, %v1395_v0, 920167782 }
 0x1cc   :  { %v1649_v44 = vmin.u32 %v705_v1, %v2852_v36  ;;  %vm1400_vm8 = vcmp.lt.s32.totalorder %v1380_v55, 2  ;;  %v1409_v46 = vsel %vm1401_vm7, %v1392_v45, %v1408_v12  ;;  %v1415_v13 = vshll.u32 %v1375_v33, 8 }
 0x1cd   :  { %v1410_v48 = vsel %vm1400_vm8, %v1407_v6, %v1409_v46  ;;  %v1411_v22 = vsel %vm1399_vm5, %v1389_v11, %v1392_v45  ;;  %v1412_v31 = vsel %vm1402_vm6, %v1398_v39, 1326507024  ;;  %v747_v10 = vshrl.u32 %v746_v56, 23 }
 0x1ce   :  { %vm1358_vm9 = vcmp.lt.s32.totalorder %v1357_v32, 2  ;;  %v707_v50 = vclz %v1649_v44  ;;  %v725_v47 = vsub.s32 4, %v701_v52  ;;  %v1403_v41 = vsel %vm1399_vm5, %v1383_v20, %v1386_v34 }
 0x1cf   :  { %v1405_v7 = vsel %vm1401_vm7, %v1389_v11, %v1404_v62  ;;  %vm1355_vm10 = vweird.f32 %v2530_v38  ;;  %v1413_v54 = vsel %vm1401_vm7, %v1395_v0, %v1412_v31  ;;  %v1652_v60 = vadd.s32 4294967169, %v747_v10  ;;  %v1888_v38 = vld [vmem:[%s3146_s0 + $0x50] sm:$0xff] }
 0x1d0   :  { %v2867_v14 = vmul.u32.u64.low %v1415_v13, %v1410_v48  ;;  %v2868_v61 = vmul.u32.u64.high %v1415_v13, %v1410_v48, %v2867_v14  ;;  %vm1359_vm11 = vcmp.eq.s32.totalorder %v1357_v32, 0  ;;  %vm1362_vm12 = vcmp.eq.s32.totalorder %v1357_v32, 2 }
 0x1d1   :  { %v1650_v57 = vadd.s32 4294967294, %v707_v50  ;;  %v1414_v2 = vsel %vm1400_vm8, %v1411_v22, %v1413_v54  ;;  %v1406_v49 = vsel %vm1400_vm8, %v1403_v41, %v1405_v7  ;;  %v753_v16 = vadd.s32 1, %v1652_v60 }
 0x1d2   :  { %v2873_v24 = vmul.u32.u64.low %v1415_v13, %v1414_v2  ;;  %v2874_v5 = vmul.u32.u64.high %v1415_v13, %v1414_v2, %v2873_v24  ;;  %v695_v43 = vadd.s32 %v2801_v27, %v2798_v4  ;;  %v726_v23 = vsel %vm641_vm4, %v725_v47, %v701_v52 }
 0x1d3   :  { %vm1651_vm13 = vcmp.lt.s32.totalorder %v1650_v57, 0  ;;  %v743_v40 = vand.u32 2147483647, %v2845_v37  ;;  %v1425_v28 = vadd.s32 1, %v2868_v61  ;;  %vm754_vm15 = vcmp.gt.s32.totalorder %v753_v16, 0 }
 0x1d4   :  { %v1859_v35 = vpop.eup %1858  ;;  %v710_v8 = vsel %vm1651_vm13, 0, %v1650_v57  ;;  %v1422_v30 = vmul.u32 %v1415_v13, %v1406_v49  ;;  %vm1424_vm0 = vc.u32 %v2874_v5, %v2867_v14  ;;  %v755_v27 = vsel %vm754_vm15, %v753_v16, 0 }
 0x1d5   :  { %v1861_v3 = vpop.eup %1860  ;;  %v1363_v18 = vxor.u32 2147483648, %v1859_v35  ;;  %v711_v55 = vsub.s32 32, %v710_v8  ;;  %v715_v34 = vsub.s32 4294967266, %v710_v8  ;;  %v712_v4 = vshll.u32 %v2852_v36, %v710_v8 }
 0x1d6   :  { %v1360_v53 = vxor.u32 2147483648, %v1861_v3  ;;  %v1426_v33 = vsel %vm1424_vm0, %v1425_v28, %v2868_v61  ;;  %v750_v1 = vand.u32 8388607, %v743_v40  ;;  %v757_v20 = vand.u32 31, %v755_v27 }
 0x1d7   :  { %v1364_v11 = vsel %vm1362_vm12, %v1363_v18, %v1861_v3  ;;  %v713_v45 = vshrl.u32 %v695_v43, %v711_v55  ;;  %v716_v0 = vadd.s32 127, %v715_v34  ;;  %v1427_v56 = vadd.s32 %v1426_v33, %v1422_v30 }
 0x1d8   :  { %v1361_v52 = vsel %vm1359_vm11, %v1859_v35, %v1360_v53  ;;  %vm2895_vm14 = vcmp.le.f32.partialorder %v639_v26, 0.7853982  ;;  %v758_v32 = vsub.s32 32, %v757_v20  ;;  %v207_v22 = vadd.f32 %v2513_v63, %v2411_v42 }
 0x1d9   :  { %v1365_v39 = vsel %vm1358_vm9, %v1361_v52, %v1364_v11  ;;  %v714_v62 = vor.u32 %v713_v45, %v712_v4  ;;  %v717_v6 = vshll.u32 %v716_v0, 23  ;;  %v1428_v46 = vadd.s32 536870912, %v1427_v56 }
 0x1da   :  { %v1366_v36 = vsel %vm1355_vm10, nan, %v1365_v39  ;;  %v728_v48 = vsel %vm2895_vm14, 0, %v726_v23  ;;  %v751_v26 = vor.u32 8388608, %v750_v1  ;;  %v761_v50 = vshrl.u32 %v1899_v15, %v758_v32 }
 0x1db   :  { %v1585_v12 = vmul.f32 0.5, %v1366_v36  ;;  %v718_v13 = vor.u32 4788187, %v717_v6  ;;  %v2906_v10 = vshrl.u32 %v1428_v46, 30  ;;  %v721_v41 = vcvt.s32.f32 %v714_v62 }
 0x1dc   :  { %v764_v7 = vshrl.u32 %v1900_v17, %v758_v32  ;;  %v767_v54 = vshrl.u32 %v1901_v19, %v758_v32  ;;  %v760_v63 = vshll.u32 %v1898_v9, %v757_v20  ;;  %v766_v61 = vshll.u32 %v1900_v17, %v757_v20 }
 0x1dd   :  { %v1598_v31 = vadd.f32 %v1888_v38, %v1585_v12  ;;  %v719_v47 = vand.u32 2147483647, %v718_v13  ;;  %v1430_v42 = vshll.u32 %v2906_v10, 30  ;;  %v770_v60 = vshrl.u32 %v1902_v21, %v758_v32 }
 0x1de   :  { %v756_v2 = vshrl.u32 %v755_v27, 5  ;;  %v763_v49 = vshll.u32 %v1899_v15, %v757_v20  ;;  %v769_v24 = vshll.u32 %v1901_v19, %v757_v20  ;;  %v762_v35 = vor.u32 %v761_v50, %v760_v63 }
 0x1df   :  { %1611 = vst.msk [vmem:[%s3148_s3 + $0x50] sm:$0xff] %vm40_vm1, %v1598_v31  ;;  %v722_v57 = vmul.f32 %v721_v41, %v719_v47  ;;  %v2921_v16 = vsub.s32 %v1427_v56, %v1430_v42  ;;  %v768_v43 = vor.u32 %v767_v54, %v766_v61  ;;  %v773_v23 = vshrl.u32 %v1903_v29, %v758_v32 }
 0x1e0   :  { %v765_v18 = vor.u32 %v764_v7, %v763_v49  ;;  %v771_v8 = vor.u32 %v770_v60, %v769_v24  ;;  %v772_v28 = vshll.u32 %v1902_v21, %v757_v20  ;;  %v732_v53 = vadd.s32 3, %v728_v48 }
 0x1e1   :  { %v723_v3 = vxor.u32 2147483648, %v722_v57  ;;  %v1433_v55 = vsub.s32 0, %v2921_v16  ;;  %v791_v34 = vshll.u32 %v751_v26, 8  ;;  %v2926_v30 = vmul.f32 30.0, %v207_v22 }
 0x1e2   :  { %v759_v4 = vshrl.u32 %v1898_v9, %v758_v32  ;;  %v774_v27 = vor.u32 %v773_v23, %v772_v28  ;;  %vm778_vm2 = vcmp.lt.s32.totalorder %v756_v2, 4  ;;  %vm775_vm3 = vcmp.lt.s32.totalorder %v756_v2, 1 }
 0x1e3   :  { %v724_v11 = vsel %vm641_vm4, %v723_v3, %v722_v57  ;;  %v1677_v45 = vmin.u32 %v1433_v55, %v2921_v16  ;;  %v780_v0 = vsel %vm778_vm2, %v768_v43, 2102212464  ;;  %vm776_vm5 = vcmp.lt.s32.totalorder %v756_v2, 2  ;;  %v1889_v55 = vld [vmem:[%s3147_s2] ss:$0 sm:$0xff] }
 0x1e4   :  { %v727_v52 = vsel %vm2895_vm14, %v2682_v59, %v724_v11  ;;  %v783_v33 = vsel %vm775_vm3, %v762_v35, %v765_v18  ;;  %v784_v39 = vsel %vm778_vm2, %v771_v8, 920167782  ;;  %vm777_vm4 = vcmp.lt.s32.totalorder %v756_v2, 3 }
 0x1e5   :  { %1862 = vcosq.f32 %v727_v52  ;;  %v1435_v56 = vclz %v1677_v45  ;;  %v787_v1 = vsel %vm775_vm3, %v765_v18, %v768_v43  ;;  %v779_v20 = vsel %vm775_vm3, %v759_v4, %v762_v35 }
 0x1e6   :  { %1864 = vsinq.f32 %v727_v52  ;;  %v781_v36 = vsel %vm777_vm4, %v765_v18, %v780_v0  ;;  %v785_v62 = vsel %vm777_vm4, %v768_v43, %v784_v39  ;;  %v788_v6 = vsel %vm778_vm2, %v774_v27, 1326507024 }
 0x1e7   :  { %v1678_v12 = vadd.s32 4294967294, %v1435_v56  ;;  %v786_v44 = vsel %vm776_vm5, %v783_v33, %v785_v62  ;;  %v789_v46 = vsel %vm777_vm4, %v771_v8, %v788_v6  ;;  %v733_v32 = vand.u32 3, %v732_v53 }
 0x1e8   :  { %v790_v13 = vsel %vm776_vm5, %v787_v1, %v789_v46  ;;  %v2940_v48 = vmul.u32.u64.low %v791_v34, %v786_v44  ;;  %v2941_v22 = vmul.u32.u64.high %v791_v34, %v786_v44, %v2940_v48  ;;  %v782_v38 = vsel %vm776_vm5, %v779_v20, %v781_v36 }
 0x1e9   :  { %vm1679_vm6 = vcmp.lt.s32.totalorder %v1678_v12, 0  ;;  %v2945_v31 = vmul.u32.u64.low %v791_v34, %v790_v13  ;;  %v2946_v26 = vmul.u32.u64.high %v791_v34, %v790_v13, %v2945_v31  ;;  %vm2950_vm7 = vcmp.le.f32.partialorder %v1367_v51, 0.7853982 }
 0x1ea   :  { %v1438_v47 = vsel %vm1679_vm6, 0, %v1678_v12  ;;  %v1453_v41 = vsub.s32 4, %v2906_v10  ;;  %v1474_v7 = vand.u32 2139095040, %v2926_v30  ;;  %vm731_vm8 = vweird.f32 %v2682_v59  ;;  %v1890_v59 = vld [vmem:[%s3146_s0 + $0x20] sm:$0xff] }
 0x1eb   :  { %vm1369_vm9 = vcmp.lt.s32.totalorder %v2741_v58, 0  ;;  %v1423_v54 = vadd.s32 %v2867_v14, %v2874_v5  ;;  %v1439_v42 = vsub.s32 32, %v1438_v47  ;;  %v1443_v63 = vsub.s32 4294967266, %v1438_v47 }
 0x1ec   :  { %vm735_vm10 = vcmp.eq.s32.totalorder %v733_v32, 0  ;;  %v798_v61 = vmul.u32 %v791_v34, %v782_v38  ;;  %v801_v51 = vadd.s32 1, %v2941_v22  ;;  %v1475_v60 = vshrl.u32 %v1474_v7, 23 }
 0x1ed   :  { %v1440_v57 = vshll.u32 %v2921_v16, %v1438_v47  ;;  %v1441_v2 = vshrl.u32 %v1423_v54, %v1439_v42  ;;  %v1444_v49 = vadd.s32 127, %v1443_v63  ;;  %vm800_vm11 = vc.u32 %v2946_v26, %v2940_v48 }
 0x1ee   :  { %vm738_vm12 = vcmp.eq.s32.totalorder %v733_v32, 2  ;;  %v1454_v14 = vsel %vm1369_vm9, %v1453_v41, %v2906_v10  ;;  %v802_v5 = vsel %vm800_vm11, %v801_v51, %v2941_v22  ;;  %v1680_v35 = vadd.s32 4294967169, %v1475_v60 }
 0x1ef   :  { %v1863_v24 = vpop.eup %1862  ;;  %v1442_v3 = vor.u32 %v1441_v2, %v1440_v57  ;;  %v1445_v18 = vshll.u32 %v1444_v49, 23  ;;  %v803_v8 = vadd.s32 %v802_v5, %v798_v61  ;;  %v1471_v28 = vand.u32 2147483647, %v2926_v30 }
 0x1f0   :  { %v1865_v43 = vpop.eup %1864  ;;  %v739_v23 = vxor.u32 2147483648, %v1863_v24  ;;  %v1481_v53 = vadd.s32 1, %v1680_v35  ;;  %v177_v34 = vadd.f32 %v1889_v55, %v2534_v25  ;;  %v1456_v4 = vsel %vm2950_vm7, 0, %v1454_v14 }
 0x1f1   :  { %v736_v16 = vxor.u32 2147483648, %v1865_v43  ;;  %v1446_v10 = vor.u32 4788187, %v1445_v18  ;;  %v804_v27 = vadd.s32 536870912, %v803_v8  ;;  %vm734_vm13 = vcmp.lt.s32.totalorder %v733_v32, 2 }
 0x1f2   :  { %v740_v11 = vsel %vm738_vm12, %v739_v23, %v1865_v43  ;;  %v1449_v45 = vcvt.s32.f32 %v1442_v3  ;;  %vm1482_vm15 = vcmp.gt.s32.totalorder %v1481_v53, 0  ;;  %v1460_v25 = vadd.s32 3, %v1456_v4 }
 0x1f3   :  { %v737_v52 = vsel %vm735_vm10, %v1863_v24, %v736_v16  ;;  %v1447_v33 = vand.u32 2147483647, %v1446_v10  ;;  %v2976_v39 = vshrl.u32 %v804_v27, 30  ;;  %v1483_v56 = vsel %vm1482_vm15, %v1481_v53, 0 }
 0x1f4   :  { %v741_v0 = vsel %vm734_vm13, %v737_v52, %v740_v11  ;;  %v1478_v20 = vand.u32 8388607, %v1471_v28  ;;  %v1485_v36 = vand.u32 31, %v1483_v56  ;;  %v2983_v44 = vmul.f32 30.0, %v177_v34 }
 0x1f5   :  { %v742_v1 = vsel %vm731_vm8, nan, %v741_v0  ;;  %v1450_v6 = vmul.f32 %v1449_v45, %v1447_v33  ;;  %v806_v12 = vshll.u32 %v2976_v39, 30  ;;  %v2993_v41 = vand.u32 3, %v1460_v25 }
 0x1f6   :  { %v1579_v62 = vmul.f32 0.5, %v742_v1  ;;  %v1486_v46 = vsub.s32 32, %v1485_v36  ;;  %v1488_v32 = vshll.u32 %v1898_v9, %v1485_v36  ;;  %v1491_v13 = vshll.u32 %v1899_v15, %v1485_v36 }
 0x1f7   :  { %v1451_v38 = vxor.u32 2147483648, %v1450_v6  ;;  %v2990_v31 = vsub.s32 %v803_v8, %v806_v12  ;;  %v1494_v47 = vshll.u32 %v1900_v17, %v1485_v36  ;;  %v1479_v7 = vor.u32 8388608, %v1478_v20 }
 0x1f8   :  { %v1592_v22 = vadd.f32 %v1890_v59, %v1579_v62  ;;  %v1489_v54 = vshrl.u32 %v1899_v15, %v1486_v46  ;;  %v1492_v42 = vshrl.u32 %v1900_v17, %v1486_v46  ;;  %v1495_v51 = vshrl.u32 %v1901_v19, %v1486_v46 }
 0x1f9   :  { %v1452_v63 = vsel %vm1369_vm9, %v1451_v38, %v1450_v6  ;;  %v809_v61 = vsub.s32 0, %v2990_v31  ;;  %v850_v60 = vand.u32 2139095040, %v2983_v44  ;;  %v1484_v2 = vshrl.u32 %v1483_v56, 5 }
 0x1fa   :  { %1605 = vst.msk [vmem:[%s3148_s3 + $0x20] sm:$0xff] %vm40_vm1, %v1592_v22  ;;  %v1455_v57 = vsel %vm2950_vm7, %v2741_v58, %v1452_v63  ;;  %v1490_v49 = vor.u32 %v1489_v54, %v1488_v32  ;;  %v1497_v24 = vshll.u32 %v1901_v19, %v1485_v36  ;;  %v1493_v5 = vor.u32 %v1492_v42, %v1491_v13 }
 0x1fb   :  { %1866 = vcosq.f32 %v1455_v57  ;;  %v1653_v14 = vmin.u32 %v809_v61, %v2990_v31  ;;  %v1496_v35 = vor.u32 %v1495_v51, %v1494_v47  ;;  %v1498_v43 = vshrl.u32 %v1902_v21, %v1486_v46 }
 0x1fc   :  { %1868 = vsinq.f32 %v1455_v57  ;;  %v1500_v23 = vshll.u32 %v1902_v21, %v1485_v36  ;;  %v1501_v3 = vshrl.u32 %v1903_v29, %v1486_v46  ;;  %v799_v50 = vadd.s32 %v2940_v48, %v2946_v26 }
 0x1fd   :  { %v811_v18 = vclz %v1653_v14  ;;  %v3016_v8 = vshll.u32 %v1479_v7, 8  ;;  %v1487_v16 = vshrl.u32 %v1898_v9, %v1486_v46  ;;  %v1499_v53 = vor.u32 %v1498_v43, %v1497_v24 }
 0x1fe   :  { %v1502_v55 = vor.u32 %v1501_v3, %v1500_v23  ;;  %v851_v34 = vshrl.u32 %v850_v60, 23  ;;  %vm1503_vm0 = vcmp.lt.s32.totalorder %v1484_v2, 1  ;;  %vm1505_vm14 = vcmp.lt.s32.totalorder %v1484_v2, 3 }
 0x1ff   :  { %v1654_v11 = vadd.s32 4294967294, %v811_v18  ;;  %vm1506_vm2 = vcmp.lt.s32.totalorder %v1484_v2, 4  ;;  %vm1463_vm3 = vcmp.eq.s32.totalorder %v2993_v41, 0  ;;  %v1511_v4 = vsel %vm1503_vm0, %v1490_v49, %v1493_v5 }
 0x200   :  { %v1508_v10 = vsel %vm1506_vm2, %v1496_v35, 2102212464  ;;  %v1512_v27 = vsel %vm1506_vm2, %v1499_v53, 920167782  ;;  %v1515_v48 = vsel %vm1503_vm0, %v1493_v5, %v1496_v35  ;;  %vm1462_vm5 = vcmp.lt.s32.totalorder %v2993_v41, 2 }
 0x201   :  { %vm745_vm4 = vcmp.lt.s32.totalorder %v2845_v37, 0  ;;  %vm1655_vm6 = vcmp.lt.s32.totalorder %v1654_v11, 0  ;;  %vm1504_vm7 = vcmp.lt.s32.totalorder %v1484_v2, 2  ;;  %v1513_v26 = vsel %vm1505_vm14, %v1496_v35, %v1512_v27 }
 0x202   :  { %v1516_v52 = vsel %vm1506_vm2, %v1502_v55, 1326507024  ;;  %vm1459_vm8 = vweird.f32 %v2741_v58  ;;  %v814_v45 = vsel %vm1655_vm6, 0, %v1654_v11  ;;  %v1507_v0 = vsel %vm1503_vm0, %v1487_v16, %v1490_v49 }
 0x203   :  { %v1514_v33 = vsel %vm1504_vm7, %v1511_v4, %v1513_v26  ;;  %v1517_v56 = vsel %vm1505_vm14, %v1499_v53, %v1516_v52  ;;  %v815_v1 = vsub.s32 32, %v814_v45  ;;  %v819_v25 = vsub.s32 4294967266, %v814_v45 }
 0x204   :  { %v1509_v20 = vsel %vm1505_vm14, %v1493_v5, %v1508_v10  ;;  %v1518_v36 = vsel %vm1504_vm7, %v1515_v48, %v1517_v56  ;;  %v3036_v12 = vmul.u32.u64.low %v3016_v8, %v1514_v33  ;;  %v3037_v46 = vmul.u32.u64.high %v3016_v8, %v1514_v33, %v3036_v12 }
 0x205   :  { %v3032_v62 = vmul.u32.u64.low %v3016_v8, %v1518_v36  ;;  %v3033_v6 = vmul.u32.u64.high %v3016_v8, %v1518_v36, %v3032_v62  ;;  %v1867_v32 = vpop.eup %1866  ;;  %v816_v13 = vshll.u32 %v2990_v31, %v814_v45  ;;  %v817_v59 = vshrl.u32 %v799_v50, %v815_v1 }
 0x206   :  { %v820_v22 = vadd.s32 127, %v819_v25  ;;  %v1656_v38 = vadd.s32 4294967169, %v851_v34  ;;  %v1869_v47 = vpop.eup %1868  ;;  %vm1466_vm9 = vcmp.eq.s32.totalorder %v2993_v41, 2  ;;  %v1467_v7 = vxor.u32 2147483648, %v1867_v32 }
 0x207   :  { %v829_v54 = vsub.s32 4, %v2976_v39  ;;  %v1510_v42 = vsel %vm1504_vm7, %v1507_v0, %v1509_v20  ;;  %v1464_v63 = vxor.u32 2147483648, %v1869_v47  ;;  %v818_v61 = vor.u32 %v817_v59, %v816_v13 }
 0x208   :  { %v821_v51 = vshll.u32 %v820_v22, 23  ;;  %v857_v60 = vadd.s32 1, %v1656_v38  ;;  %v1468_v57 = vsel %vm1466_vm9, %v1467_v7, %v1869_v47  ;;  %vm1528_vm10 = vc.u32 %v3033_v6, %v3036_v12 }
 0x209   :  { %v1529_v31 = vadd.s32 1, %v3037_v46  ;;  %v847_v49 = vand.u32 2147483647, %v2983_v44  ;;  %v1465_v24 = vsel %vm1463_vm3, %v1867_v32, %v1464_v63  ;;  %v1526_v5 = vmul.u32 %v3016_v8, %v1510_v42 }
 0x20a   :  { %v822_v14 = vor.u32 4788187, %v821_v51  ;;  %vm858_vm11 = vcmp.gt.s32.totalorder %v857_v60, 0  ;;  %v1469_v2 = vsel %vm1462_vm5, %v1465_v24, %v1468_v57  ;;  %v830_v35 = vsel %vm745_vm4, %v829_v54, %v2976_v39  ;;  %v1891_v39 = vld [vmem:[%s3146_s0 + $0x58] sm:$0xff] }
 0x20b   :  { %v1530_v43 = vsel %vm1528_vm10, %v1529_v31, %v3037_v46  ;;  %v859_v23 = vsel %vm858_vm11, %v857_v60, 0  ;;  %v1470_v3 = vsel %vm1459_vm8, nan, %v1469_v2  ;;  %v825_v18 = vcvt.s32.f32 %v818_v61 }
 0x20c   :  { %v823_v50 = vand.u32 2147483647, %v822_v14  ;;  %v1531_v16 = vadd.s32 %v1530_v43, %v1526_v5  ;;  %v1586_v53 = vmul.f32 0.5, %v1470_v3  ;;  %v861_v55 = vand.u32 31, %v859_v23 }
 0x20d   :  { %vm3061_vm12 = vcmp.le.f32.partialorder %v743_v40, 0.7853982  ;;  %v854_v10 = vand.u32 8388607, %v847_v49  ;;  %vm835_vm7 = vweird.f32 %v2845_v37  ;;  %vm1473_vm8 = vcmp.lt.s32.totalorder %v2926_v30, 0 }
 0x20e   :  { %v826_v8 = vmul.f32 %v825_v18, %v823_v50  ;;  %v1532_v34 = vadd.s32 536870912, %v1531_v16  ;;  %v1599_v11 = vadd.f32 %v1891_v39, %v1586_v53  ;;  %v832_v58 = vsel %vm3061_vm12, 0, %v830_v35 }
 0x20f   :  { %v862_v4 = vsub.s32 32, %v861_v55  ;;  %v864_v40 = vshll.u32 %v1898_v9, %v861_v55  ;;  %v867_v26 = vshll.u32 %v1899_v15, %v861_v55  ;;  %v870_v0 = vshll.u32 %v1900_v17, %v861_v55 }
 0x210   :  { %v827_v27 = vxor.u32 2147483648, %v826_v8  ;;  %v3072_v48 = vshrl.u32 %v1532_v34, 30  ;;  %1612 = vst.msk [vmem:[%s3148_s3 + $0x58] sm:$0xff] %vm40_vm1, %v1599_v11  ;;  %v873_v25 = vshll.u32 %v1901_v19, %v861_v55  ;;  %v876_v59 = vshll.u32 %v1902_v21, %v861_v55 }
 0x211   :  { %v865_v52 = vshrl.u32 %v1899_v15, %v862_v4  ;;  %v868_v45 = vshrl.u32 %v1900_v17, %v862_v4  ;;  %v871_v33 = vshrl.u32 %v1901_v19, %v862_v4  ;;  %v874_v20 = vshrl.u32 %v1902_v21, %v862_v4 }
 0x212   :  { %v828_v56 = vsel %vm745_vm4, %v827_v27, %v826_v8  ;;  %v1534_v1 = vshll.u32 %v3072_v48, 30  ;;  %v860_v15 = vshrl.u32 %v859_v23, 5  ;;  %v877_v22 = vshrl.u32 %v1903_v29, %v862_v4 }
 0x213   :  { %v831_v36 = vsel %vm3061_vm12, %v2845_v37, %v828_v56  ;;  %v866_v62 = vor.u32 %v865_v52, %v864_v40  ;;  %v869_v46 = vor.u32 %v868_v45, %v867_v26  ;;  %v872_v32 = vor.u32 %v871_v33, %v870_v0 }
 0x214   :  { %1870 = vcosq.f32 %v831_v36  ;;  %v1535_v17 = vsub.s32 %v1531_v16, %v1534_v1  ;;  %v875_v13 = vor.u32 %v874_v20, %v873_v25  ;;  %v836_v38 = vadd.s32 3, %v832_v58 }
 0x215   :  { %1872 = vsinq.f32 %v831_v36  ;;  %v855_v47 = vor.u32 8388608, %v854_v10  ;;  %v878_v7 = vor.u32 %v877_v22, %v876_v59  ;;  %vm879_vm13 = vcmp.lt.s32.totalorder %v860_v15, 1 }
 0x216   :  { %v1537_v19 = vsub.s32 0, %v1535_v17  ;;  %vm881_vm15 = vcmp.lt.s32.totalorder %v860_v15, 3  ;;  %vm882_vm0 = vcmp.lt.s32.totalorder %v860_v15, 4  ;;  %v887_v63 = vsel %vm879_vm13, %v866_v62, %v869_v46 }
 0x217   :  { %v884_v42 = vsel %vm882_vm0, %v872_v32, 2102212464  ;;  %v888_v61 = vsel %vm882_vm0, %v875_v13, 920167782  ;;  %v863_v51 = vshrl.u32 %v1898_v9, %v862_v4  ;;  %v891_v57 = vsel %vm879_vm13, %v869_v46, %v872_v32 }
 0x218   :  { %v1681_v54 = vmin.u32 %v1537_v19, %v1535_v17  ;;  %v889_v60 = vsel %vm881_vm15, %v872_v32, %v888_v61  ;;  %v892_v31 = vsel %vm882_vm0, %v878_v7, 1326507024  ;;  %v837_v21 = vand.u32 3, %v836_v38 }
 0x219   :  { %vm880_vm14 = vcmp.lt.s32.totalorder %v860_v15, 2  ;;  %v895_v29 = vshll.u32 %v855_v47, 8  ;;  %v883_v14 = vsel %vm879_vm13, %v863_v51, %v866_v62  ;;  %v885_v5 = vsel %vm881_vm15, %v869_v46, %v884_v42  ;;  %v1892_v15 = vld [vmem:[%s3146_s0 + $0x28] sm:$0xff] }
 0x21a   :  { %v1539_v24 = vclz %v1681_v54  ;;  %v890_v2 = vsel %vm880_vm14, %v887_v63, %v889_v60  ;;  %v893_v35 = vsel %vm881_vm15, %v875_v13, %v892_v31  ;;  %vm838_vm2 = vcmp.lt.s32.totalorder %v837_v21, 2 }
 0x21b   :  { %v894_v23 = vsel %vm880_vm14, %v891_v57, %v893_v35  ;;  %v3098_v3 = vmul.u32.u64.low %v895_v29, %v890_v2  ;;  %v3099_v50 = vmul.u32.u64.high %v895_v29, %v890_v2, %v3098_v3  ;;  %v886_v53 = vsel %vm880_vm14, %v883_v14, %v885_v5 }
 0x21c   :  { %v1682_v43 = vadd.s32 4294967294, %v1539_v24  ;;  %v3101_v9 = vmul.u32.u64.low %v895_v29, %v894_v23  ;;  %v3102_v18 = vmul.u32.u64.high %v895_v29, %v894_v23, %v3101_v9  ;;  %vm839_vm5 = vcmp.eq.s32.totalorder %v837_v21, 0 }
 0x21d   :  { %vm842_vm4 = vcmp.eq.s32.totalorder %v837_v21, 2  ;;  %v1527_v39 = vadd.s32 %v3036_v12, %v3033_v6  ;;  %v902_v4 = vmul.u32 %v895_v29, %v886_v53  ;;  %v905_v27 = vadd.s32 1, %v3099_v50 }
 0x21e   :  { %v1871_v16 = vpop.eup %1870  ;;  %vm1683_vm3 = vcmp.lt.s32.totalorder %v1682_v43, 0  ;;  %vm904_vm6 = vc.u32 %v3102_v18, %v3098_v3  ;;  %v1557_v13 = vsub.s32 4, %v3072_v48  ;;  %vm1472_vm9 = vcmp.le.f32.partialorder %v1471_v28, 0.7853982 }
 0x21f   :  { %v1873_v55 = vpop.eup %1872  ;;  %v843_v41 = vxor.u32 2147483648, %v1871_v16  ;;  %v1542_v8 = vsel %vm1683_vm3, 0, %v1682_v43  ;;  %v906_v33 = vsel %vm904_vm6, %v905_v27, %v3099_v50  ;;  %v903_v21 = vadd.s32 %v3098_v3, %v3102_v18 }
 0x220   :  { %v840_v34 = vxor.u32 2147483648, %v1873_v55  ;;  %v1543_v11 = vsub.s32 32, %v1542_v8  ;;  %v1547_v58 = vsub.s32 4294967266, %v1542_v8  ;;  %v1544_v26 = vshll.u32 %v1535_v17, %v1542_v8 }
 0x221   :  { %v844_v10 = vsel %vm842_vm4, %v843_v41, %v1873_v55  ;;  %v907_v1 = vadd.s32 %v906_v33, %v902_v4  ;;  %v1558_v47 = vsel %vm1473_vm8, %v1557_v13, %v3072_v48  ;;  %vm1563_vm15 = vweird.f32 %v2926_v30 }
 0x222   :  { %v841_v40 = vsel %vm839_vm5, %v1871_v16, %v840_v34  ;;  %v1545_v52 = vshrl.u32 %v1527_v39, %v1543_v11  ;;  %v1548_v45 = vadd.s32 127, %v1547_v58  ;;  %v1560_v63 = vsel %vm1472_vm9, 0, %v1558_v47  ;;  %v1893_v11 = vld [vmem:[%s3146_s0 + $0x60] sm:$0xff] }
 0x223   :  { %v845_v0 = vsel %vm838_vm2, %v841_v40, %v844_v10  ;;  %v908_v36 = vadd.s32 536870912, %v907_v1  ;;  %v1564_v51 = vadd.s32 3, %v1560_v63  ;;  %vm849_vm0 = vcmp.lt.s32.totalorder %v2983_v44, 0 }
 0x224   :  { %v846_v56 = vsel %vm835_vm7, nan, %v845_v0  ;;  %v1546_v6 = vor.u32 %v1545_v52, %v1544_v26  ;;  %v1549_v12 = vshll.u32 %v1548_v45, 23  ;;  %vm848_vm14 = vcmp.le.f32.partialorder %v847_v49, 0.7853982 }
 0x225   :  { %v1580_v25 = vmul.f32 0.5, %v846_v56  ;;  %v909_v32 = vshrl.u32 %v908_v36, 30  ;;  %v1565_v31 = vand.u32 3, %v1564_v51  ;;  %vm939_vm4 = vweird.f32 %v2983_v44 }
 0x226   :  { %v1550_v20 = vor.u32 4788187, %v1549_v12  ;;  %v1553_v17 = vcvt.s32.f32 %v1546_v6 }
 0x227   :  { %v1593_v62 = vadd.f32 %v1892_v15, %v1580_v25  ;;  %v910_v59 = vshll.u32 %v909_v32, 30  ;;  %vm1570_vm11 = vcmp.eq.s32.totalorder %v1565_v31, 2  ;;  %vm1567_vm12 = vcmp.eq.s32.totalorder %v1565_v31, 0 }
 0x228   :  { %v1551_v46 = vand.u32 2147483647, %v1550_v20  ;;  %vm1566_vm13 = vcmp.lt.s32.totalorder %v1565_v31, 2  ;;  %v933_v39 = vsub.s32 4, %v909_v32  ;;  %v1894_v20 = vld [vmem:[%s3146_s0 + $0x30] sm:$0xff] }
 0x229   :  { %1606 = vst.msk [vmem:[%s3148_s3 + $0x28] sm:$0xff] %vm40_vm1, %v1593_v62  ;;  %v911_v38 = vsub.s32 %v907_v1, %v910_v59 }
 0x22a   :  { %v1554_v37 = vmul.f32 %v1553_v17, %v1551_v46  ;;  %v934_v4 = vsel %vm849_vm0, %v933_v39, %v909_v32 }
 0x22b   :  { %v913_v7 = vsub.s32 0, %v911_v38  ;;  %v936_v40 = vsel %vm848_vm14, 0, %v934_v4 }
 0x22c   :  { %v1555_v22 = vxor.u32 2147483648, %v1554_v37  ;;  %v940_v26 = vadd.s32 3, %v936_v40 }
 0x22d   :  { %v1657_v42 = vmin.u32 %v913_v7, %v911_v38 }
 0x22e   :  { %v1556_v19 = vsel %vm1473_vm8, %v1555_v22, %v1554_v37  ;;  %v941_v52 = vand.u32 3, %v940_v26 }
 0x22f   :  { %v1559_v54 = vsel %vm1472_vm9, %v2926_v30, %v1556_v19  ;;  %v915_v61 = vclz %v1657_v42 }
 0x230   :  { %1874 = vcosq.f32 %v1559_v54  ;;  %vm946_vm2 = vcmp.eq.s32.totalorder %v941_v52, 2  ;;  %vm943_vm3 = vcmp.eq.s32.totalorder %v941_v52, 0  ;;  %vm942_vm5 = vcmp.lt.s32.totalorder %v941_v52, 2 }
 0x231   :  { %1876 = vsinq.f32 %v1559_v54  ;;  %v1658_v60 = vadd.s32 4294967294, %v915_v61 }
 0x233   :  { %vm1659_vm10 = vcmp.lt.s32.totalorder %v1658_v60, 0 }
 0x234   :  { %v918_v57 = vsel %vm1659_vm10, 0, %v1658_v60 }
 0x235   :  { %v919_v24 = vsub.s32 32, %v918_v57  ;;  %v923_v28 = vsub.s32 4294967266, %v918_v57  ;;  %v920_v14 = vshll.u32 %v911_v38, %v918_v57 }
 0x237   :  { %v921_v48 = vshrl.u32 %v903_v21, %v919_v24  ;;  %v924_v5 = vadd.s32 127, %v923_v28 }
 0x239   :  { %v922_v23 = vor.u32 %v921_v48, %v920_v14  ;;  %v925_v50 = vshll.u32 %v924_v5, 23 }
 0x23a   :  { %v1875_v29 = vpop.eup %1874 }
 0x23b   :  { %v1877_v2 = vpop.eup %1876  ;;  %v1571_v35 = vxor.u32 2147483648, %v1875_v29  ;;  %v926_v53 = vor.u32 4788187, %v925_v50  ;;  %v929_v41 = vcvt.s32.f32 %v922_v23 }
 0x23c   :  { %v1568_v43 = vxor.u32 2147483648, %v1877_v2 }
 0x23d   :  { %v1572_v9 = vsel %vm1570_vm11, %v1571_v35, %v1877_v2  ;;  %v927_v55 = vand.u32 2147483647, %v926_v53 }
 0x23e   :  { %v1569_v16 = vsel %vm1567_vm12, %v1875_v29, %v1568_v43 }
 0x23f   :  { %v1573_v3 = vsel %vm1566_vm13, %v1569_v16, %v1572_v9  ;;  %v930_v34 = vmul.f32 %v929_v41, %v927_v55 }
 0x240   :  { %v1574_v18 = vsel %vm1563_vm15, nan, %v1573_v3 }
 0x241   :  { %v1587_v8 = vmul.f32 0.5, %v1574_v18  ;;  %v931_v10 = vxor.u32 2147483648, %v930_v34 }
 0x243   :  { %v1600_v58 = vadd.f32 %v1893_v11, %v1587_v8  ;;  %v932_v30 = vsel %vm849_vm0, %v931_v10, %v930_v34 }
 0x244   :  { %v935_v27 = vsel %vm848_vm14, %v2983_v44, %v932_v30 }
 0x245   :  { %1613 = vst.msk [vmem:[%s3148_s3 + $0x60] sm:$0xff] %vm40_vm1, %v1600_v58  ;;  %1878 = vcosq.f32 %v935_v27 }
 0x246   :  { %1880 = vsinq.f32 %v935_v27 }
 0x24f   :  { %v1879_v45 = vpop.eup %1878 }
 0x250   :  { %v1881_v0 = vpop.eup %1880  ;;  %v947_v33 = vxor.u32 2147483648, %v1879_v45 }
 0x251   :  { %v944_v56 = vxor.u32 2147483648, %v1881_v0 }
 0x252   :  { %v948_v6 = vsel %vm946_vm2, %v947_v33, %v1881_v0 }
 0x253   :  { %v945_v12 = vsel %vm943_vm3, %v1879_v45, %v944_v56 }
 0x254   :  { %v949_v49 = vsel %vm942_vm5, %v945_v12, %v948_v6 }
 0x255   :  { %v950_v1 = vsel %vm939_vm4, nan, %v949_v49 }
 0x256   :  { %v1581_v25 = vmul.f32 0.5, %v950_v1 }
 0x258   :  { %v1594_v36 = vadd.f32 %v1894_v20, %v1581_v25 }
 0x25a   :  { %1607 = vst.msk [vmem:[%s3148_s3 + $0x30] sm:$0xff] %vm40_vm1, %v1594_v36 }

</bundles_post_ra>
